<compile_context>
chip_gen: v6e
topology: v6e:2x2x1
jax: 0.10.0
libtpu: 0.0.40
codegen_flags: <defaults>
</compile_context>

<pallas_src>
import functools

import jax
import jax.numpy as jnp
from jax.experimental import pallas as pl
from jax.experimental.pallas import tpu as pltpu


def _round_up(n, m):
    return ((n + m - 1) // m) * m


# --------------------------------------------------------------------------- #
# Kernel
# --------------------------------------------------------------------------- #
def _seq2seq_kernel(x_ref,       # (T, B_pad, I)          time-major encoder input, f32
                    wie_ref,     # (I, G_pad)             encoder input->gates weights
                    whe_ref,     # (H, G_pad)             encoder hidden->gates weights
                    be_ref,      # (1, G_pad)             encoder bias (b_ih + b_hh), f32
                    wdec_hbm,    # (H, 2*G_pad + O_pad)   [W_hh_d | W_eff | Wfc], in HBM
                    bd_ref,      # (1, 2*G_pad + O_pad)   [bd | b_eff | bfc], f32
                    out_ref,     # (F, B_pad, O_pad)      time-major decoder outputs
                    wdec_vmem,   # scratch (H, 2*G_pad + O_pad)
                    dma_sem):    # DMA semaphore
    T, B, I = x_ref.shape
    H, G_pad = whe_ref.shape
    O_pad = wdec_hbm.shape[1] - 2 * G_pad
    F = out_ref.shape[0]
    f32 = jnp.float32

    # Kick off the decoder-weight DMA immediately; it completes while the
    # encoder runs (biggest relative win on v5e's lower HBM bandwidth).
    dec_cp = pltpu.make_async_copy(wdec_hbm, wdec_vmem, dma_sem)
    dec_cp.start()

    wie = wie_ref[...]
    whe = whe_ref[...]
    wdt = whe.dtype

    def gates_to_state(gates, c):
        # gates: (B, G_pad) f32, layout [i | f | g | o] in lanes [0, 4H);
        # zero-padded lanes [4H, G_pad) are never read.
        if H % 128 == 0:
            # Gate blocks are lane-aligned: slice first, activate each block.
            i_g = jax.nn.sigmoid(gates[:, 0 * H:1 * H])
            f_g = jax.nn.sigmoid(gates[:, 1 * H:2 * H])
            g_g = jnp.tanh(gates[:, 2 * H:3 * H])
            o_g = jax.nn.sigmoid(gates[:, 3 * H:4 * H])
        else:
            # Small H: activate the packed gate block once (2 EUP vreg ops),
            # then slice — the lane shifts go to the XLU slot.
            sg = jax.nn.sigmoid(gates)
            th = jnp.tanh(gates)
            i_g = sg[:, 0 * H:1 * H]
            f_g = sg[:, 1 * H:2 * H]
            g_g = th[:, 2 * H:3 * H]
            o_g = sg[:, 3 * H:4 * H]
        c_new = f_g * c + i_g * g_g
        h_new = o_g * jnp.tanh(c_new)
        return h_new, c_new

    # ------- encoder input projection: one batched matmul for all T steps ----
    x2d = x_ref[...].reshape(T * B, I).astype(wdt)
    xproj = (jnp.dot(x2d, wie, preferred_element_type=f32)
             + jnp.broadcast_to(be_ref[...], (T * B, G_pad))).reshape(T, B, G_pad)

    h = jnp.zeros((B, H), f32)
    c = jnp.zeros((B, H), f32)

    # ------- encoder recurrence (T static & small -> fully unrolled) ---------
    # TODO(synk): switch to lax.fori_loop / a time grid axis once T > ~16 to
    # bound vreg live ranges and compile time.
    for t in range(T):
        gates = xproj[t] + jnp.dot(h.astype(wdt), whe, preferred_element_type=f32)
        h, c = gates_to_state(gates, c)

    # ------- decoder (autoregressive, fc head folded into the recurrence) ----
    dec_cp.wait()
    wdec = wdec_vmem[...]
    wd0 = wdec[:, :G_pad]                       # W_hh_d       (decoder step 0)
    wdc = wdec[:, G_pad:]                       # [W_eff | Wfc]
    bd0 = jnp.broadcast_to(bd_ref[:, :G_pad], (B, G_pad))
    bdc = jnp.broadcast_to(bd_ref[:, G_pad:], (B, G_pad + O_pad))

    # Step 0: the decoder input is identically zero -> gates = h @ W_hh_d + bd.
    gates = jnp.dot(h.astype(wdt), wd0, preferred_element_type=f32) + bd0
    h, c = gates_to_state(gates, c)

    # Steps 1..F: one fused matmul per step yields this step's gates AND the
    # previous step's fc output (out_{t-1} = h_{t-1} @ Wfc + bfc, which is also
    # the folded decoder input), removing the step->dec_in->gates serial hop.
    # TODO(synk): if the bundle dump shows the loop-invariant RHS re-pushed
    # each step, switch to explicit pltpu.matmul_push_rhs / matmul_acc_lhs.
    for t in range(1, F + 1):
        comb = jnp.dot(h.astype(wdt), wdc, preferred_element_type=f32) + bdc
        out_ref[t - 1] = comb[:, G_pad:].astype(out_ref.dtype)   # lane-dense store
        if t < F:
            h, c = gates_to_state(comb[:, :G_pad], c)


# --------------------------------------------------------------------------- #
# Parameter packing (done once, outside the per-call path)
# --------------------------------------------------------------------------- #
def pack_params(params, weight_dtype=jnp.bfloat16):
    """Pad/fuse PyTorch-layout params into the kernel's packed layout.

    - Gates stay contiguous ([i|f|g|o], width 4H), padded once to G_pad=⌈4H/128⌉·128.
      The padded gate columns (and their bias entries) are zero AND never read.
    - fc head folded into the decoder recurrence:
        W_eff = W_hh_d + Wfc @ W_ih_d,   b_eff = bd + bfc @ W_ih_d
      (valid because dec_in_t = h_{t-1} @ Wfc + bfc for every step t >= 1).
    - The decoder consumes a single matrix [W_hh_d | W_eff | Wfc] so one async
      copy moves all decoder weights HBM -> VMEM.
    - Folding is done in f32; only the final matrices are cast to weight_dtype
      (bf16 by default — MXU-native; state/accumulation stay f32).
    """
    H = params["whe"].shape[0]
    O = params["wfc"].shape[1]
    G = 4 * H
    G_pad = _round_up(G, 128)
    O_pad = _round_up(O, 128)

    def pad_g(w):   # zero-pad the gate axis G -> G_pad
        return jnp.pad(w.astype(jnp.float32), ((0, 0), (0, G_pad - G)))

    wfc = params["wfc"].astype(jnp.float32)            # (H, O)
    bfc = params["bfc"].astype(jnp.float32)            # (1, O)
    wid = params["wid"].astype(jnp.float32)            # (O, 4H)

    w_eff = params["whd"].astype(jnp.float32) + wfc @ wid     # (H, 4H)
    b_eff = params["bd"].astype(jnp.float32) + bfc @ wid      # (1, 4H)

    wfc_p = jnp.pad(wfc, ((0, 0), (0, O_pad - O)))            # (H, O_pad)
    bfc_p = jnp.pad(bfc, ((0, 0), (0, O_pad - O)))            # (1, O_pad)

    wdec = jnp.concatenate([pad_g(params["whd"]), pad_g(w_eff), wfc_p], axis=1)
    bd_all = jnp.concatenate([pad_g(params["bd"]), pad_g(b_eff), bfc_p], axis=1)

    return {
        "wie": pad_g(params["wie"]).astype(weight_dtype),   # (I, G_pad)
        "whe": pad_g(params["whe"]).astype(weight_dtype),   # (H, G_pad)
        "be": pad_g(params["be"]),                          # (1, G_pad)            f32
        "wdec": wdec.astype(weight_dtype),                  # (H, 2*G_pad + O_pad)
        "bd": bd_all,                                       # (1, 2*G_pad + O_pad)  f32
    }


# --------------------------------------------------------------------------- #
# Public forward
# --------------------------------------------------------------------------- #
@functools.partial(jax.jit, static_argnames=("forecast_steps", "output_size"))
def seq2seq_lstm_forward(encoder_input, packed, forecast_steps, output_size):
    """encoder_input: (B, T, input_size) f32 -> (B, forecast_steps, output_size)."""
    B, T, I = encoder_input.shape
    H, G_pad = packed["whe"].shape
    dec_cols = packed["wdec"].shape[1]
    O_pad = dec_cols - 2 * G_pad
    F = forecast_steps
    # Pad batch to a sublane multiple.  For larger deployment batches keep ONE
    # call: per-step matmul latency is nearly flat in B up to the MXU height,
    # so extra batch rows ride the same serial chain almost for free.
    B_pad = _round_up(B, 8)

    # Time-major input so the hoisted projection reshapes contiguously and
    # xproj[t] is a clean (B, G_pad) slab inside the kernel.
    x = jnp.transpose(encoder_input.astype(jnp.float32), (1, 0, 2))
    x = jnp.pad(x, ((0, 0), (0, B_pad - B), (0, 0)))            # (T, B_pad, I)

    wdt = packed["wdec"].dtype
    wbytes = sum(int(v.size) * v.dtype.itemsize for v in packed.values())
    resident = (4 * int(x.size) + 4 * F * B_pad * O_pad + wbytes
                + int(packed["wdec"].size) * wdt.itemsize)       # + decoder VMEM scratch
    vmem_limit = max(2 * resident + (4 << 20), 32 << 20)
    try:  # clamp to this generation's physical VMEM (64 MiB on v7x).
        vmem_cap = int(pltpu.get_tpu_info().vmem_capacity_bytes)
    except Exception:
        vmem_cap = 64 << 20
    vmem_limit = int(min(vmem_limit, vmem_cap))

    flops = 2 * B_pad * (T * I * G_pad                  # hoisted input projection
                         + T * H * G_pad                # encoder recurrence
                         + H * G_pad                    # decoder step 0
                         + F * H * (G_pad + O_pad))     # fused decoder steps
    transcendentals = B_pad * 5 * H * (T + F + 1)
    bytes_accessed = 4 * int(x.size) + 4 * F * B_pad * O_pad + 2 * wbytes

    vmem = pl.BlockSpec(memory_space=pltpu.MemorySpace.VMEM)
    out_tm = pl.pallas_call(
        _seq2seq_kernel,
        out_shape=jax.ShapeDtypeStruct((F, B_pad, O_pad), jnp.float32),
        in_specs=[vmem, vmem, vmem, vmem,
                  pl.BlockSpec(memory_space=pl.ANY),    # decoder weights stay in HBM
                  vmem],
        out_specs=vmem,
        scratch_shapes=[pltpu.VMEM((H, dec_cols), wdt),
                        pltpu.SemaphoreType.DMA],
        compiler_params=pltpu.CompilerParams(vmem_limit_bytes=vmem_limit),
        cost_estimate=pl.CostEstimate(flops=int(flops),
                                      transcendentals=int(transcendentals),
                                      bytes_accessed=int(bytes_accessed)),
    )(x, packed["wie"], packed["whe"], packed["be"], packed["wdec"], packed["bd"])

    # (F, B_pad, O_pad) -> (B, F, O).  Slice before transposing (tiny array).
    return jnp.transpose(out_tm[:, :B, :output_size], (1, 0, 2))


# --------------------------------------------------------------------------- #
# Synthetic parameters + pure-JAX reference
# --------------------------------------------------------------------------- #
def init_params(key, input_size, hidden_size, output_size):
    """PyTorch nn.LSTM / nn.Linear shaped params, pre-transposed to (in, 4H)
    etc. so the kernel computes x @ W; the two LSTM bias vectors pre-summed."""
    ks = jax.random.split(key, 8)
    s = 0.1
    H4 = 4 * hidden_size
    return {
        "wie": jax.random.normal(ks[0], (input_size, H4), jnp.float32) * s,
        "whe": jax.random.normal(ks[1], (hidden_size, H4), jnp.float32) * s,
        "be": jax.random.normal(ks[2], (1, H4), jnp.float32) * s,
        "wid": jax.random.normal(ks[3], (output_size, H4), jnp.float32) * s,
        "whd": jax.random.normal(ks[4], (hidden_size, H4), jnp.float32) * s,
        "bd": jax.random.normal(ks[5], (1, H4), jnp.float32) * s,
        "wfc": jax.random.normal(ks[6], (hidden_size, output_size), jnp.float32) * s,
        "bfc": jax.random.normal(ks[7], (1, output_size), jnp.float32) * s,
    }


def _reference_forward(encoder_input, params, forecast_steps):
    """Pure-JAX f32 reference replicating the PyTorch forward (no teacher forcing)."""
    B = encoder_input.shape[0]
    H = params["whe"].shape[0]

    def cell(x_t, h, c, wi, wh, b):
        g = x_t @ wi + h @ wh + b
        i = jax.nn.sigmoid(g[:, 0 * H:1 * H])
        f = jax.nn.sigmoid(g[:, 1 * H:2 * H])
        gg = jnp.tanh(g[:, 2 * H:3 * H])
        o = jax.nn.sigmoid(g[:, 3 * H:4 * H])
        c = f * c + i * gg
        return o * jnp.tanh(c), c

    h = jnp.zeros((B, H), jnp.float32)
    c = jnp.zeros((B, H), jnp.float32)
    for t in range(encoder_input.shape[1]):
        h, c = cell(encoder_input[:, t, :], h, c,
                    params["wie"], params["whe"], params["be"])
    dec_in = jnp.zeros((B, params["wfc"].shape[1]), jnp.float32)
    outs = []
    for _ in range(forecast_steps):
        h, c = cell(dec_in, h, c, params["wid"], params["whd"], params["bd"])
        step = h @ params["wfc"] + params["bfc"]
        outs.append(step[:, None, :])
        dec_in = step
    return jnp.concatenate(outs, axis=1)


if __name__ == "__main__":
    batch = 2
    seq_len = 8
    input_size = 8
    hidden_size = 32
    output_size = 4
    forecast_steps = 5

    key = jax.random.PRNGKey(0)
    k_x, k_p = jax.random.split(key)
    encoder_input = jax.random.normal(k_x, (batch, seq_len, input_size), jnp.float32)
    params = init_params(k_p, input_size, hidden_size, output_size)

    ref = _reference_forward(encoder_input, params, forecast_steps)

    # Exact-precision validation (f32 weights, same folded kernel math).
    packed_f32 = pack_params(params, weight_dtype=jnp.float32)
    out_f32 = jax.block_until_ready(
        seq2seq_lstm_forward(encoder_input, packed_f32, forecast_steps, output_size))
    assert out_f32.shape == (batch, forecast_steps, output_size), out_f32.shape
    err_f32 = float(jnp.max(jnp.abs(out_f32 - ref)))
    assert err_f32 < 2e-4, f"f32 kernel mismatch: {err_f32}"

    # Fast path (bf16 weights, f32 state/accumulation).
    packed_bf16 = pack_params(params)   # default weight_dtype=bfloat16
    out_bf16 = jax.block_until_ready(
        seq2seq_lstm_forward(encoder_input, packed_bf16, forecast_steps, output_size))
    assert out_bf16.shape == (batch, forecast_steps, output_size), out_bf16.shape
    err_bf16 = float(jnp.max(jnp.abs(out_bf16 - ref)))
    assert err_bf16 < 5e-2, f"bf16 kernel mismatch: {err_bf16}"

    print("KERNEL_OK")
</pallas_src>

<mosaic_0001>
module attributes {stable_mosaic.version = 11 : i64} {
  func.func @_seq2seq_kernel(%arg0: memref<8x8x8xf32, #tpu.memory_space<vmem>>, %arg1: memref<8x128xf32, #tpu.memory_space<vmem>>, %arg2: memref<32x128xf32, #tpu.memory_space<vmem>>, %arg3: memref<1x128xf32, #tpu.memory_space<vmem>>, %arg4: memref<32x384xf32, #tpu.memory_space<any>>, %arg5: memref<1x384xf32, #tpu.memory_space<vmem>>, %arg6: memref<5x8x128xf32, #tpu.memory_space<vmem>>, %arg7: memref<32x384xf32, #tpu.memory_space<vmem>>, %arg8: memref<!tpu.dma_semaphore, #tpu.memory_space<semaphore_mem>>) attributes {dimension_semantics = [], scalar_prefetch = 0 : i64, scratch_operands = 2 : i64, tpu.core_type = #tpu.core_type<tc>} {
    tpu.enqueue_dma source(%arg4 : memref<32x384xf32, #tpu.memory_space<any>>) target(%arg7 : memref<32x384xf32, #tpu.memory_space<vmem>>) target_semaphore(%arg8 : memref<!tpu.dma_semaphore, #tpu.memory_space<semaphore_mem>>)
    %c0 = arith.constant 0 : index
    %c0_0 = arith.constant 0 : index
    %0 = vector.load %arg1[%c0, %c0_0] : memref<8x128xf32, #tpu.memory_space<vmem>>, vector<8x128xf32>
    %c0_1 = arith.constant 0 : index
    %c0_2 = arith.constant 0 : index
    %1 = vector.load %arg2[%c0_1, %c0_2] : memref<32x128xf32, #tpu.memory_space<vmem>>, vector<32x128xf32>
    %c0_3 = arith.constant 0 : index
    %c0_4 = arith.constant 0 : index
    %c0_5 = arith.constant 0 : index
    %2 = vector.load %arg0[%c0_3, %c0_4, %c0_5] : memref<8x8x8xf32, #tpu.memory_space<vmem>>, vector<8x8x8xf32>
    %3 = vector.shape_cast %2 : vector<8x8x8xf32> to vector<64x8xf32>
    %cst = arith.constant dense<0.000000e+00> : vector<64x128xf32>
    %4 = tpu.matmul %3, %0, %cst {dimension_numbers = #tpu.dot_dimension_numbers<[1], [0], [0], [1], [0, 0, 1, 1], [], []>} : vector<64x8xf32>, vector<8x128xf32>, vector<64x128xf32> -> vector<64x128xf32>
    %c0_6 = arith.constant 0 : index
    %c0_7 = arith.constant 0 : index
    %5 = vector.load %arg3[%c0_6, %c0_7] : memref<1x128xf32, #tpu.memory_space<vmem>>, vector<1x128xf32>
    %6 = vector.shape_cast %5 : vector<1x128xf32> to vector<1x128xf32>
    %7 = vector.broadcast %6 : vector<1x128xf32> to vector<64x128xf32>
    %8 = arith.addf %4, %7 : vector<64x128xf32>
    %9 = vector.shape_cast %8 : vector<64x128xf32> to vector<8x8x128xf32>
    %cst_8 = arith.constant 0.000000e+00 : f32
    %10 = vector.broadcast %cst_8 : f32 to vector<8x32xf32>
    %cst_9 = arith.constant 0.000000e+00 : f32
    %11 = vector.broadcast %cst_9 : f32 to vector<8x32xf32>
    %12 = vector.extract_strided_slice %9 {offsets = [0, 0, 0], sizes = [1, 8, 128], strides = [1, 1, 1]} : vector<8x8x128xf32> to vector<1x8x128xf32>
    %13 = vector.shape_cast %12 : vector<1x8x128xf32> to vector<8x128xf32>
    %cst_10 = arith.constant dense<0.000000e+00> : vector<8x128xf32>
    %14 = tpu.matmul %10, %1, %cst_10 {dimension_numbers = #tpu.dot_dimension_numbers<[1], [0], [0], [1], [0, 0, 1, 1], [], []>} : vector<8x32xf32>, vector<32x128xf32>, vector<8x128xf32> -> vector<8x128xf32>
    %15 = arith.addf %13, %14 : vector<8x128xf32>
    %16 = arith.negf %15 : vector<8x128xf32>
    %17 = math.exp %16 : vector<8x128xf32>
    %cst_11 = arith.constant 1.000000e+00 : f32
    %18 = vector.broadcast %cst_11 : f32 to vector<8x128xf32>
    %19 = arith.addf %18, %17 : vector<8x128xf32>
    %20 = arith.divf %18, %19 : vector<8x128xf32>
    %21 = math.tanh %15 : vector<8x128xf32>
    %22 = vector.extract_strided_slice %20 {offsets = [0, 0], sizes = [8, 32], strides = [1, 1]} : vector<8x128xf32> to vector<8x32xf32>
    %23 = vector.extract_strided_slice %20 {offsets = [0, 32], sizes = [8, 32], strides = [1, 1]} : vector<8x128xf32> to vector<8x32xf32>
    %24 = vector.extract_strided_slice %21 {offsets = [0, 64], sizes = [8, 32], strides = [1, 1]} : vector<8x128xf32> to vector<8x32xf32>
    %25 = vector.extract_strided_slice %20 {offsets = [0, 96], sizes = [8, 32], strides = [1, 1]} : vector<8x128xf32> to vector<8x32xf32>
    %26 = arith.mulf %23, %11 : vector<8x32xf32>
    %27 = arith.mulf %22, %24 : vector<8x32xf32>
    %28 = arith.addf %26, %27 : vector<8x32xf32>
    %29 = math.tanh %28 : vector<8x32xf32>
    %30 = arith.mulf %25, %29 : vector<8x32xf32>
    %31 = vector.extract_strided_slice %9 {offsets = [1, 0, 0], sizes = [1, 8, 128], strides = [1, 1, 1]} : vector<8x8x128xf32> to vector<1x8x128xf32>
    %32 = vector.shape_cast %31 : vector<1x8x128xf32> to vector<8x128xf32>
    %cst_12 = arith.constant dense<0.000000e+00> : vector<8x128xf32>
    %33 = tpu.matmul %30, %1, %cst_12 {dimension_numbers = #tpu.dot_dimension_numbers<[1], [0], [0], [1], [0, 0, 1, 1], [], []>} : vector<8x32xf32>, vector<32x128xf32>, vector<8x128xf32> -> vector<8x128xf32>
    %34 = arith.addf %32, %33 : vector<8x128xf32>
    %35 = arith.negf %34 : vector<8x128xf32>
    %36 = math.exp %35 : vector<8x128xf32>
    %cst_13 = arith.constant 1.000000e+00 : f32
    %37 = vector.broadcast %cst_13 : f32 to vector<8x128xf32>
    %38 = arith.addf %37, %36 : vector<8x128xf32>
    %39 = arith.divf %37, %38 : vector<8x128xf32>
    %40 = math.tanh %34 : vector<8x128xf32>
    %41 = vector.extract_strided_slice %39 {offsets = [0, 0], sizes = [8, 32], strides = [1, 1]} : vector<8x128xf32> to vector<8x32xf32>
    %42 = vector.extract_strided_slice %39 {offsets = [0, 32], sizes = [8, 32], strides = [1, 1]} : vector<8x128xf32> to vector<8x32xf32>
    %43 = vector.extract_strided_slice %40 {offsets = [0, 64], sizes = [8, 32], strides = [1, 1]} : vector<8x128xf32> to vector<8x32xf32>
    %44 = vector.extract_strided_slice %39 {offsets = [0, 96], sizes = [8, 32], strides = [1, 1]} : vector<8x128xf32> to vector<8x32xf32>
    %45 = arith.mulf %42, %28 : vector<8x32xf32>
    %46 = arith.mulf %41, %43 : vector<8x32xf32>
    %47 = arith.addf %45, %46 : vector<8x32xf32>
    %48 = math.tanh %47 : vector<8x32xf32>
    %49 = arith.mulf %44, %48 : vector<8x32xf32>
    %50 = vector.extract_strided_slice %9 {offsets = [2, 0, 0], sizes = [1, 8, 128], strides = [1, 1, 1]} : vector<8x8x128xf32> to vector<1x8x128xf32>
    %51 = vector.shape_cast %50 : vector<1x8x128xf32> to vector<8x128xf32>
    %cst_14 = arith.constant dense<0.000000e+00> : vector<8x128xf32>
    %52 = tpu.matmul %49, %1, %cst_14 {dimension_numbers = #tpu.dot_dimension_numbers<[1], [0], [0], [1], [0, 0, 1, 1], [], []>} : vector<8x32xf32>, vector<32x128xf32>, vector<8x128xf32> -> vector<8x128xf32>
    %53 = arith.addf %51, %52 : vector<8x128xf32>
    %54 = arith.negf %53 : vector<8x128xf32>
    %55 = math.exp %54 : vector<8x128xf32>
    %cst_15 = arith.constant 1.000000e+00 : f32
    %56 = vector.broadcast %cst_15 : f32 to vector<8x128xf32>
    %57 = arith.addf %56, %55 : vector<8x128xf32>
    %58 = arith.divf %56, %57 : vector<8x128xf32>
    %59 = math.tanh %53 : vector<8x128xf32>
    %60 = vector.extract_strided_slice %58 {offsets = [0, 0], sizes = [8, 32], strides = [1, 1]} : vector<8x128xf32> to vector<8x32xf32>
    %61 = vector.extract_strided_slice %58 {offsets = [0, 32], sizes = [8, 32], strides = [1, 1]} : vector<8x128xf32> to vector<8x32xf32>
    %62 = vector.extract_strided_slice %59 {offsets = [0, 64], sizes = [8, 32], strides = [1, 1]} : vector<8x128xf32> to vector<8x32xf32>
    %63 = vector.extract_strided_slice %58 {offsets = [0, 96], sizes = [8, 32], strides = [1, 1]} : vector<8x128xf32> to vector<8x32xf32>
    %64 = arith.mulf %61, %47 : vector<8x32xf32>
    %65 = arith.mulf %60, %62 : vector<8x32xf32>
    %66 = arith.addf %64, %65 : vector<8x32xf32>
    %67 = math.tanh %66 : vector<8x32xf32>
    %68 = arith.mulf %63, %67 : vector<8x32xf32>
    %69 = vector.extract_strided_slice %9 {offsets = [3, 0, 0], sizes = [1, 8, 128], strides = [1, 1, 1]} : vector<8x8x128xf32> to vector<1x8x128xf32>
    %70 = vector.shape_cast %69 : vector<1x8x128xf32> to vector<8x128xf32>
    %cst_16 = arith.constant dense<0.000000e+00> : vector<8x128xf32>
    %71 = tpu.matmul %68, %1, %cst_16 {dimension_numbers = #tpu.dot_dimension_numbers<[1], [0], [0], [1], [0, 0, 1, 1], [], []>} : vector<8x32xf32>, vector<32x128xf32>, vector<8x128xf32> -> vector<8x128xf32>
    %72 = arith.addf %70, %71 : vector<8x128xf32>
    %73 = arith.negf %72 : vector<8x128xf32>
    %74 = math.exp %73 : vector<8x128xf32>
    %cst_17 = arith.constant 1.000000e+00 : f32
    %75 = vector.broadcast %cst_17 : f32 to vector<8x128xf32>
    %76 = arith.addf %75, %74 : vector<8x128xf32>
    %77 = arith.divf %75, %76 : vector<8x128xf32>
    %78 = math.tanh %72 : vector<8x128xf32>
    %79 = vector.extract_strided_slice %77 {offsets = [0, 0], sizes = [8, 32], strides = [1, 1]} : vector<8x128xf32> to vector<8x32xf32>
    %80 = vector.extract_strided_slice %77 {offsets = [0, 32], sizes = [8, 32], strides = [1, 1]} : vector<8x128xf32> to vector<8x32xf32>
    %81 = vector.extract_strided_slice %78 {offsets = [0, 64], sizes = [8, 32], strides = [1, 1]} : vector<8x128xf32> to vector<8x32xf32>
    %82 = vector.extract_strided_slice %77 {offsets = [0, 96], sizes = [8, 32], strides = [1, 1]} : vector<8x128xf32> to vector<8x32xf32>
    %83 = arith.mulf %80, %66 : vector<8x32xf32>
    %84 = arith.mulf %79, %81 : vector<8x32xf32>
    %85 = arith.addf %83, %84 : vector<8x32xf32>
    %86 = math.tanh %85 : vector<8x32xf32>
    %87 = arith.mulf %82, %86 : vector<8x32xf32>
    %88 = vector.extract_strided_slice %9 {offsets = [4, 0, 0], sizes = [1, 8, 128], strides = [1, 1, 1]} : vector<8x8x128xf32> to vector<1x8x128xf32>
    %89 = vector.shape_cast %88 : vector<1x8x128xf32> to vector<8x128xf32>
    %cst_18 = arith.constant dense<0.000000e+00> : vector<8x128xf32>
    %90 = tpu.matmul %87, %1, %cst_18 {dimension_numbers = #tpu.dot_dimension_numbers<[1], [0], [0], [1], [0, 0, 1, 1], [], []>} : vector<8x32xf32>, vector<32x128xf32>, vector<8x128xf32> -> vector<8x128xf32>
    %91 = arith.addf %89, %90 : vector<8x128xf32>
    %92 = arith.negf %91 : vector<8x128xf32>
    %93 = math.exp %92 : vector<8x128xf32>
    %cst_19 = arith.constant 1.000000e+00 : f32
    %94 = vector.broadcast %cst_19 : f32 to vector<8x128xf32>
    %95 = arith.addf %94, %93 : vector<8x128xf32>
    %96 = arith.divf %94, %95 : vector<8x128xf32>
    %97 = math.tanh %91 : vector<8x128xf32>
    %98 = vector.extract_strided_slice %96 {offsets = [0, 0], sizes = [8, 32], strides = [1, 1]} : vector<8x128xf32> to vector<8x32xf32>
    %99 = vector.extract_strided_slice %96 {offsets = [0, 32], sizes = [8, 32], strides = [1, 1]} : vector<8x128xf32> to vector<8x32xf32>
    %100 = vector.extract_strided_slice %97 {offsets = [0, 64], sizes = [8, 32], strides = [1, 1]} : vector<8x128xf32> to vector<8x32xf32>
    %101 = vector.extract_strided_slice %96 {offsets = [0, 96], sizes = [8, 32], strides = [1, 1]} : vector<8x128xf32> to vector<8x32xf32>
    %102 = arith.mulf %99, %85 : vector<8x32xf32>
    %103 = arith.mulf %98, %100 : vector<8x32xf32>
    %104 = arith.addf %102, %103 : vector<8x32xf32>
    %105 = math.tanh %104 : vector<8x32xf32>
    %106 = arith.mulf %101, %105 : vector<8x32xf32>
    %107 = vector.extract_strided_slice %9 {offsets = [5, 0, 0], sizes = [1, 8, 128], strides = [1, 1, 1]} : vector<8x8x128xf32> to vector<1x8x128xf32>
    %108 = vector.shape_cast %107 : vector<1x8x128xf32> to vector<8x128xf32>
    %cst_20 = arith.constant dense<0.000000e+00> : vector<8x128xf32>
    %109 = tpu.matmul %106, %1, %cst_20 {dimension_numbers = #tpu.dot_dimension_numbers<[1], [0], [0], [1], [0, 0, 1, 1], [], []>} : vector<8x32xf32>, vector<32x128xf32>, vector<8x128xf32> -> vector<8x128xf32>
    %110 = arith.addf %108, %109 : vector<8x128xf32>
    %111 = arith.negf %110 : vector<8x128xf32>
    %112 = math.exp %111 : vector<8x128xf32>
    %cst_21 = arith.constant 1.000000e+00 : f32
    %113 = vector.broadcast %cst_21 : f32 to vector<8x128xf32>
    %114 = arith.addf %113, %112 : vector<8x128xf32>
    %115 = arith.divf %113, %114 : vector<8x128xf32>
    %116 = math.tanh %110 : vector<8x128xf32>
    %117 = vector.extract_strided_slice %115 {offsets = [0, 0], sizes = [8, 32], strides = [1, 1]} : vector<8x128xf32> to vector<8x32xf32>
    %118 = vector.extract_strided_slice %115 {offsets = [0, 32], sizes = [8, 32], strides = [1, 1]} : vector<8x128xf32> to vector<8x32xf32>
    %119 = vector.extract_strided_slice %116 {offsets = [0, 64], sizes = [8, 32], strides = [1, 1]} : vector<8x128xf32> to vector<8x32xf32>
    %120 = vector.extract_strided_slice %115 {offsets = [0, 96], sizes = [8, 32], strides = [1, 1]} : vector<8x128xf32> to vector<8x32xf32>
    %121 = arith.mulf %118, %104 : vector<8x32xf32>
    %122 = arith.mulf %117, %119 : vector<8x32xf32>
    %123 = arith.addf %121, %122 : vector<8x32xf32>
    %124 = math.tanh %123 : vector<8x32xf32>
    %125 = arith.mulf %120, %124 : vector<8x32xf32>
    %126 = vector.extract_strided_slice %9 {offsets = [6, 0, 0], sizes = [1, 8, 128], strides = [1, 1, 1]} : vector<8x8x128xf32> to vector<1x8x128xf32>
    %127 = vector.shape_cast %126 : vector<1x8x128xf32> to vector<8x128xf32>
    %cst_22 = arith.constant dense<0.000000e+00> : vector<8x128xf32>
    %128 = tpu.matmul %125, %1, %cst_22 {dimension_numbers = #tpu.dot_dimension_numbers<[1], [0], [0], [1], [0, 0, 1, 1], [], []>} : vector<8x32xf32>, vector<32x128xf32>, vector<8x128xf32> -> vector<8x128xf32>
    %129 = arith.addf %127, %128 : vector<8x128xf32>
    %130 = arith.negf %129 : vector<8x128xf32>
    %131 = math.exp %130 : vector<8x128xf32>
    %cst_23 = arith.constant 1.000000e+00 : f32
    %132 = vector.broadcast %cst_23 : f32 to vector<8x128xf32>
    %133 = arith.addf %132, %131 : vector<8x128xf32>
    %134 = arith.divf %132, %133 : vector<8x128xf32>
    %135 = math.tanh %129 : vector<8x128xf32>
    %136 = vector.extract_strided_slice %134 {offsets = [0, 0], sizes = [8, 32], strides = [1, 1]} : vector<8x128xf32> to vector<8x32xf32>
    %137 = vector.extract_strided_slice %134 {offsets = [0, 32], sizes = [8, 32], strides = [1, 1]} : vector<8x128xf32> to vector<8x32xf32>
    %138 = vector.extract_strided_slice %135 {offsets = [0, 64], sizes = [8, 32], strides = [1, 1]} : vector<8x128xf32> to vector<8x32xf32>
    %139 = vector.extract_strided_slice %134 {offsets = [0, 96], sizes = [8, 32], strides = [1, 1]} : vector<8x128xf32> to vector<8x32xf32>
    %140 = arith.mulf %137, %123 : vector<8x32xf32>
    %141 = arith.mulf %136, %138 : vector<8x32xf32>
    %142 = arith.addf %140, %141 : vector<8x32xf32>
    %143 = math.tanh %142 : vector<8x32xf32>
    %144 = arith.mulf %139, %143 : vector<8x32xf32>
    %145 = vector.extract_strided_slice %9 {offsets = [7, 0, 0], sizes = [1, 8, 128], strides = [1, 1, 1]} : vector<8x8x128xf32> to vector<1x8x128xf32>
    %146 = vector.shape_cast %145 : vector<1x8x128xf32> to vector<8x128xf32>
    %cst_24 = arith.constant dense<0.000000e+00> : vector<8x128xf32>
    %147 = tpu.matmul %144, %1, %cst_24 {dimension_numbers = #tpu.dot_dimension_numbers<[1], [0], [0], [1], [0, 0, 1, 1], [], []>} : vector<8x32xf32>, vector<32x128xf32>, vector<8x128xf32> -> vector<8x128xf32>
    %148 = arith.addf %146, %147 : vector<8x128xf32>
    %149 = arith.negf %148 : vector<8x128xf32>
    %150 = math.exp %149 : vector<8x128xf32>
    %cst_25 = arith.constant 1.000000e+00 : f32
    %151 = vector.broadcast %cst_25 : f32 to vector<8x128xf32>
    %152 = arith.addf %151, %150 : vector<8x128xf32>
    %153 = arith.divf %151, %152 : vector<8x128xf32>
    %154 = math.tanh %148 : vector<8x128xf32>
    %155 = vector.extract_strided_slice %153 {offsets = [0, 0], sizes = [8, 32], strides = [1, 1]} : vector<8x128xf32> to vector<8x32xf32>
    %156 = vector.extract_strided_slice %153 {offsets = [0, 32], sizes = [8, 32], strides = [1, 1]} : vector<8x128xf32> to vector<8x32xf32>
    %157 = vector.extract_strided_slice %154 {offsets = [0, 64], sizes = [8, 32], strides = [1, 1]} : vector<8x128xf32> to vector<8x32xf32>
    %158 = vector.extract_strided_slice %153 {offsets = [0, 96], sizes = [8, 32], strides = [1, 1]} : vector<8x128xf32> to vector<8x32xf32>
    %159 = arith.mulf %156, %142 : vector<8x32xf32>
    %160 = arith.mulf %155, %157 : vector<8x32xf32>
    %161 = arith.addf %159, %160 : vector<8x32xf32>
    %162 = math.tanh %161 : vector<8x32xf32>
    %163 = arith.mulf %158, %162 : vector<8x32xf32>
    tpu.wait_dma2 semaphore(%arg8 : memref<!tpu.dma_semaphore, #tpu.memory_space<semaphore_mem>>) src(%arg4 : memref<32x384xf32, #tpu.memory_space<any>>) dst(%arg7 : memref<32x384xf32, #tpu.memory_space<vmem>>)
    %c0_26 = arith.constant 0 : index
    %c0_27 = arith.constant 0 : index
    %164 = vector.load %arg7[%c0_26, %c0_27] : memref<32x384xf32, #tpu.memory_space<vmem>>, vector<32x384xf32>
    %165 = vector.extract_strided_slice %164 {offsets = [0, 0], sizes = [32, 128], strides = [1, 1]} : vector<32x384xf32> to vector<32x128xf32>
    %166 = vector.extract_strided_slice %164 {offsets = [0, 128], sizes = [32, 256], strides = [1, 1]} : vector<32x384xf32> to vector<32x256xf32>
    %c0_28 = arith.constant 0 : index
    %c0_29 = arith.constant 0 : index
    %167 = vector.load %arg5[%c0_28, %c0_29] : memref<1x384xf32, #tpu.memory_space<vmem>>, vector<1x128xf32>
    %168 = vector.shape_cast %167 : vector<1x128xf32> to vector<1x128xf32>
    %169 = vector.broadcast %168 : vector<1x128xf32> to vector<8x128xf32>
    %c0_30 = arith.constant 0 : index
    %c128 = arith.constant 128 : index
    %170 = vector.load %arg5[%c0_30, %c128] : memref<1x384xf32, #tpu.memory_space<vmem>>, vector<1x256xf32>
    %171 = vector.shape_cast %170 : vector<1x256xf32> to vector<1x256xf32>
    %172 = vector.broadcast %171 : vector<1x256xf32> to vector<8x256xf32>
    %cst_31 = arith.constant dense<0.000000e+00> : vector<8x128xf32>
    %173 = tpu.matmul %163, %165, %cst_31 {dimension_numbers = #tpu.dot_dimension_numbers<[1], [0], [0], [1], [0, 0, 1, 1], [], []>} : vector<8x32xf32>, vector<32x128xf32>, vector<8x128xf32> -> vector<8x128xf32>
    %174 = arith.addf %173, %169 : vector<8x128xf32>
    %175 = arith.negf %174 : vector<8x128xf32>
    %176 = math.exp %175 : vector<8x128xf32>
    %cst_32 = arith.constant 1.000000e+00 : f32
    %177 = vector.broadcast %cst_32 : f32 to vector<8x128xf32>
    %178 = arith.addf %177, %176 : vector<8x128xf32>
    %179 = arith.divf %177, %178 : vector<8x128xf32>
    %180 = math.tanh %174 : vector<8x128xf32>
    %181 = vector.extract_strided_slice %179 {offsets = [0, 0], sizes = [8, 32], strides = [1, 1]} : vector<8x128xf32> to vector<8x32xf32>
    %182 = vector.extract_strided_slice %179 {offsets = [0, 32], sizes = [8, 32], strides = [1, 1]} : vector<8x128xf32> to vector<8x32xf32>
    %183 = vector.extract_strided_slice %180 {offsets = [0, 64], sizes = [8, 32], strides = [1, 1]} : vector<8x128xf32> to vector<8x32xf32>
    %184 = vector.extract_strided_slice %179 {offsets = [0, 96], sizes = [8, 32], strides = [1, 1]} : vector<8x128xf32> to vector<8x32xf32>
    %185 = arith.mulf %182, %161 : vector<8x32xf32>
    %186 = arith.mulf %181, %183 : vector<8x32xf32>
    %187 = arith.addf %185, %186 : vector<8x32xf32>
    %188 = math.tanh %187 : vector<8x32xf32>
    %189 = arith.mulf %184, %188 : vector<8x32xf32>
    %cst_33 = arith.constant dense<0.000000e+00> : vector<8x256xf32>
    %190 = tpu.matmul %189, %166, %cst_33 {dimension_numbers = #tpu.dot_dimension_numbers<[1], [0], [0], [1], [0, 0, 1, 1], [], []>} : vector<8x32xf32>, vector<32x256xf32>, vector<8x256xf32> -> vector<8x256xf32>
    %191 = arith.addf %190, %172 : vector<8x256xf32>
    %192 = vector.extract_strided_slice %191 {offsets = [0, 128], sizes = [8, 128], strides = [1, 1]} : vector<8x256xf32> to vector<8x128xf32>
    %c0_34 = arith.constant 0 : index
    %c0_35 = arith.constant 0 : index
    %c0_36 = arith.constant 0 : index
    %193 = vector.load %arg6[%c0_34, %c0_35, %c0_36] : memref<5x8x128xf32, #tpu.memory_space<vmem>>, vector<1x8x128xf32>
    %194 = vector.shape_cast %193 : vector<1x8x128xf32> to vector<8x128xf32>
    %195 = vector.shape_cast %192 : vector<8x128xf32> to vector<1x8x128xf32>
    tpu.vector_store %arg6[%c0_34, %c0_35, %c0_36], %195 {strides = array<i32>} : memref<5x8x128xf32, #tpu.memory_space<vmem>>, vector<1x8x128xf32>,
    %196 = vector.extract_strided_slice %191 {offsets = [0, 0], sizes = [8, 128], strides = [1, 1]} : vector<8x256xf32> to vector<8x128xf32>
    %197 = arith.negf %196 : vector<8x128xf32>
    %198 = math.exp %197 : vector<8x128xf32>
    %cst_37 = arith.constant 1.000000e+00 : f32
    %199 = vector.broadcast %cst_37 : f32 to vector<8x128xf32>
    %200 = arith.addf %199, %198 : vector<8x128xf32>
    %201 = arith.divf %199, %200 : vector<8x128xf32>
    %202 = math.tanh %196 : vector<8x128xf32>
    %203 = vector.extract_strided_slice %201 {offsets = [0, 0], sizes = [8, 32], strides = [1, 1]} : vector<8x128xf32> to vector<8x32xf32>
    %204 = vector.extract_strided_slice %201 {offsets = [0, 32], sizes = [8, 32], strides = [1, 1]} : vector<8x128xf32> to vector<8x32xf32>
    %205 = vector.extract_strided_slice %202 {offsets = [0, 64], sizes = [8, 32], strides = [1, 1]} : vector<8x128xf32> to vector<8x32xf32>
    %206 = vector.extract_strided_slice %201 {offsets = [0, 96], sizes = [8, 32], strides = [1, 1]} : vector<8x128xf32> to vector<8x32xf32>
    %207 = arith.mulf %204, %187 : vector<8x32xf32>
    %208 = arith.mulf %203, %205 : vector<8x32xf32>
    %209 = arith.addf %207, %208 : vector<8x32xf32>
    %210 = math.tanh %209 : vector<8x32xf32>
    %211 = arith.mulf %206, %210 : vector<8x32xf32>
    %cst_38 = arith.constant dense<0.000000e+00> : vector<8x256xf32>
    %212 = tpu.matmul %211, %166, %cst_38 {dimension_numbers = #tpu.dot_dimension_numbers<[1], [0], [0], [1], [0, 0, 1, 1], [], []>} : vector<8x32xf32>, vector<32x256xf32>, vector<8x256xf32> -> vector<8x256xf32>
    %213 = arith.addf %212, %172 : vector<8x256xf32>
    %214 = vector.extract_strided_slice %213 {offsets = [0, 128], sizes = [8, 128], strides = [1, 1]} : vector<8x256xf32> to vector<8x128xf32>
    %c1 = arith.constant 1 : index
    %c0_39 = arith.constant 0 : index
    %c0_40 = arith.constant 0 : index
    %215 = vector.load %arg6[%c1, %c0_39, %c0_40] : memref<5x8x128xf32, #tpu.memory_space<vmem>>, vector<1x8x128xf32>
    %216 = vector.shape_cast %215 : vector<1x8x128xf32> to vector<8x128xf32>
    %217 = vector.shape_cast %214 : vector<8x128xf32> to vector<1x8x128xf32>
    tpu.vector_store %arg6[%c1, %c0_39, %c0_40], %217 {strides = array<i32>} : memref<5x8x128xf32, #tpu.memory_space<vmem>>, vector<1x8x128xf32>,
    %218 = vector.extract_strided_slice %213 {offsets = [0, 0], sizes = [8, 128], strides = [1, 1]} : vector<8x256xf32> to vector<8x128xf32>
    %219 = arith.negf %218 : vector<8x128xf32>
    %220 = math.exp %219 : vector<8x128xf32>
    %cst_41 = arith.constant 1.000000e+00 : f32
    %221 = vector.broadcast %cst_41 : f32 to vector<8x128xf32>
    %222 = arith.addf %221, %220 : vector<8x128xf32>
    %223 = arith.divf %221, %222 : vector<8x128xf32>
    %224 = math.tanh %218 : vector<8x128xf32>
    %225 = vector.extract_strided_slice %223 {offsets = [0, 0], sizes = [8, 32], strides = [1, 1]} : vector<8x128xf32> to vector<8x32xf32>
    %226 = vector.extract_strided_slice %223 {offsets = [0, 32], sizes = [8, 32], strides = [1, 1]} : vector<8x128xf32> to vector<8x32xf32>
    %227 = vector.extract_strided_slice %224 {offsets = [0, 64], sizes = [8, 32], strides = [1, 1]} : vector<8x128xf32> to vector<8x32xf32>
    %228 = vector.extract_strided_slice %223 {offsets = [0, 96], sizes = [8, 32], strides = [1, 1]} : vector<8x128xf32> to vector<8x32xf32>
    %229 = arith.mulf %226, %209 : vector<8x32xf32>
    %230 = arith.mulf %225, %227 : vector<8x32xf32>
    %231 = arith.addf %229, %230 : vector<8x32xf32>
    %232 = math.tanh %231 : vector<8x32xf32>
    %233 = arith.mulf %228, %232 : vector<8x32xf32>
    %cst_42 = arith.constant dense<0.000000e+00> : vector<8x256xf32>
    %234 = tpu.matmul %233, %166, %cst_42 {dimension_numbers = #tpu.dot_dimension_numbers<[1], [0], [0], [1], [0, 0, 1, 1], [], []>} : vector<8x32xf32>, vector<32x256xf32>, vector<8x256xf32> -> vector<8x256xf32>
    %235 = arith.addf %234, %172 : vector<8x256xf32>
    %236 = vector.extract_strided_slice %235 {offsets = [0, 128], sizes = [8, 128], strides = [1, 1]} : vector<8x256xf32> to vector<8x128xf32>
    %c2 = arith.constant 2 : index
    %c0_43 = arith.constant 0 : index
    %c0_44 = arith.constant 0 : index
    %237 = vector.load %arg6[%c2, %c0_43, %c0_44] : memref<5x8x128xf32, #tpu.memory_space<vmem>>, vector<1x8x128xf32>
    %238 = vector.shape_cast %237 : vector<1x8x128xf32> to vector<8x128xf32>
    %239 = vector.shape_cast %236 : vector<8x128xf32> to vector<1x8x128xf32>
    tpu.vector_store %arg6[%c2, %c0_43, %c0_44], %239 {strides = array<i32>} : memref<5x8x128xf32, #tpu.memory_space<vmem>>, vector<1x8x128xf32>,
    %240 = vector.extract_strided_slice %235 {offsets = [0, 0], sizes = [8, 128], strides = [1, 1]} : vector<8x256xf32> to vector<8x128xf32>
    %241 = arith.negf %240 : vector<8x128xf32>
    %242 = math.exp %241 : vector<8x128xf32>
    %cst_45 = arith.constant 1.000000e+00 : f32
    %243 = vector.broadcast %cst_45 : f32 to vector<8x128xf32>
    %244 = arith.addf %243, %242 : vector<8x128xf32>
    %245 = arith.divf %243, %244 : vector<8x128xf32>
    %246 = math.tanh %240 : vector<8x128xf32>
    %247 = vector.extract_strided_slice %245 {offsets = [0, 0], sizes = [8, 32], strides = [1, 1]} : vector<8x128xf32> to vector<8x32xf32>
    %248 = vector.extract_strided_slice %245 {offsets = [0, 32], sizes = [8, 32], strides = [1, 1]} : vector<8x128xf32> to vector<8x32xf32>
    %249 = vector.extract_strided_slice %246 {offsets = [0, 64], sizes = [8, 32], strides = [1, 1]} : vector<8x128xf32> to vector<8x32xf32>
    %250 = vector.extract_strided_slice %245 {offsets = [0, 96], sizes = [8, 32], strides = [1, 1]} : vector<8x128xf32> to vector<8x32xf32>
    %251 = arith.mulf %248, %231 : vector<8x32xf32>
    %252 = arith.mulf %247, %249 : vector<8x32xf32>
    %253 = arith.addf %251, %252 : vector<8x32xf32>
    %254 = math.tanh %253 : vector<8x32xf32>
    %255 = arith.mulf %250, %254 : vector<8x32xf32>
    %cst_46 = arith.constant dense<0.000000e+00> : vector<8x256xf32>
    %256 = tpu.matmul %255, %166, %cst_46 {dimension_numbers = #tpu.dot_dimension_numbers<[1], [0], [0], [1], [0, 0, 1, 1], [], []>} : vector<8x32xf32>, vector<32x256xf32>, vector<8x256xf32> -> vector<8x256xf32>
    %257 = arith.addf %256, %172 : vector<8x256xf32>
    %258 = vector.extract_strided_slice %257 {offsets = [0, 128], sizes = [8, 128], strides = [1, 1]} : vector<8x256xf32> to vector<8x128xf32>
    %c3 = arith.constant 3 : index
    %c0_47 = arith.constant 0 : index
    %c0_48 = arith.constant 0 : index
    %259 = vector.load %arg6[%c3, %c0_47, %c0_48] : memref<5x8x128xf32, #tpu.memory_space<vmem>>, vector<1x8x128xf32>
    %260 = vector.shape_cast %259 : vector<1x8x128xf32> to vector<8x128xf32>
    %261 = vector.shape_cast %258 : vector<8x128xf32> to vector<1x8x128xf32>
    tpu.vector_store %arg6[%c3, %c0_47, %c0_48], %261 {strides = array<i32>} : memref<5x8x128xf32, #tpu.memory_space<vmem>>, vector<1x8x128xf32>,
    %262 = vector.extract_strided_slice %257 {offsets = [0, 0], sizes = [8, 128], strides = [1, 1]} : vector<8x256xf32> to vector<8x128xf32>
    %263 = arith.negf %262 : vector<8x128xf32>
    %264 = math.exp %263 : vector<8x128xf32>
    %cst_49 = arith.constant 1.000000e+00 : f32
    %265 = vector.broadcast %cst_49 : f32 to vector<8x128xf32>
    %266 = arith.addf %265, %264 : vector<8x128xf32>
    %267 = arith.divf %265, %266 : vector<8x128xf32>
    %268 = math.tanh %262 : vector<8x128xf32>
    %269 = vector.extract_strided_slice %267 {offsets = [0, 0], sizes = [8, 32], strides = [1, 1]} : vector<8x128xf32> to vector<8x32xf32>
    %270 = vector.extract_strided_slice %267 {offsets = [0, 32], sizes = [8, 32], strides = [1, 1]} : vector<8x128xf32> to vector<8x32xf32>
    %271 = vector.extract_strided_slice %268 {offsets = [0, 64], sizes = [8, 32], strides = [1, 1]} : vector<8x128xf32> to vector<8x32xf32>
    %272 = vector.extract_strided_slice %267 {offsets = [0, 96], sizes = [8, 32], strides = [1, 1]} : vector<8x128xf32> to vector<8x32xf32>
    %273 = arith.mulf %270, %253 : vector<8x32xf32>
    %274 = arith.mulf %269, %271 : vector<8x32xf32>
    %275 = arith.addf %273, %274 : vector<8x32xf32>
    %276 = math.tanh %275 : vector<8x32xf32>
    %277 = arith.mulf %272, %276 : vector<8x32xf32>
    %cst_50 = arith.constant dense<0.000000e+00> : vector<8x256xf32>
    %278 = tpu.matmul %277, %166, %cst_50 {dimension_numbers = #tpu.dot_dimension_numbers<[1], [0], [0], [1], [0, 0, 1, 1], [], []>} : vector<8x32xf32>, vector<32x256xf32>, vector<8x256xf32> -> vector<8x256xf32>
    %279 = arith.addf %278, %172 : vector<8x256xf32>
    %280 = vector.extract_strided_slice %279 {offsets = [0, 128], sizes = [8, 128], strides = [1, 1]} : vector<8x256xf32> to vector<8x128xf32>
    %c4 = arith.constant 4 : index
    %c0_51 = arith.constant 0 : index
    %c0_52 = arith.constant 0 : index
    %281 = vector.load %arg6[%c4, %c0_51, %c0_52] : memref<5x8x128xf32, #tpu.memory_space<vmem>>, vector<1x8x128xf32>
    %282 = vector.shape_cast %281 : vector<1x8x128xf32> to vector<8x128xf32>
    %283 = vector.shape_cast %280 : vector<8x128xf32> to vector<1x8x128xf32>
    tpu.vector_store %arg6[%c4, %c0_51, %c0_52], %283 {strides = array<i32>} : memref<5x8x128xf32, #tpu.memory_space<vmem>>, vector<1x8x128xf32>,
    return
  }
}

</mosaic_0001>

<bundles_post_ra>
// kernel: seq2seq_lstm_forward.1
= control target key start
LH: loop header
LB: loop body
LE: loop exit
PB: predicated region body
PF: predicated region fallthrough
CT: control target
= control target key end

     0   :  { %11 = vsyncpa [#allocation5], 0  ;;  %s2029_s21 = smov [#allocation4]   ;;  %s2437_s0 = inlined_call_operand.vmem [shape: f32[8,8,8], index: 0, kind: input, shape index: {}]   ;;  %s2438_s1 = inlined_call_operand.vmem [shape: f32[8,128], index: 1, kind: input, shape index: {}]   ;;  %s2439_s2 = inlined_call_operand.hbm [shape: f32[32,128], index: 2, kind: input, shape index: {}]   ;;  %s2440_s3 = inlined_call_operand.vmem [shape: f32[1,128], index: 3, kind: input, shape index: {}]   ;;  %s2441_s4 = inlined_call_operand.vmem [shape: f32[32,384], index: 4, kind: input, shape index: {}]   ;;  %s2442_s5 = inlined_call_operand.vmem [shape: f32[1,384], index: 5, kind: input, shape index: {}]   ;;  %s2443_s6 = inlined_call_operand.vmem [shape: f32[5,8,128], index: 6, kind: output, shape index: {}]  }
   0x1   :  { %s21_s22 = sshll.u32 %s2029_s21, 4  ;;  %s22_s22 = int_to_ptr.vmem [resolvable:$true] %s21_s22 }
   0x2   :  { %s2013_s23 = scalar_lea.vmem %s22_s22, 512  ;;  %p2018_p1 = scmp.lt.s32.totalorder %s22_s22, %s22_s22 }
   0x3   :  { %p2014_p0 = scmp.ne.s32.totalorder %s22_s22, %s2013_s23  ;;  %p2019_p2 = scmp.lt.s32.totalorder %s2013_s23, %s2013_s23 }
   0x5   :  { %p2020_p3 = por %p2019_p2, %p2018_p1 }
   0x7   :  { %p2021_p4 = pnand %p2020_p3, %p2014_p0 }
   0x9   :  { %2024 = shalt.err (!%p2021_p4)
}
   0xa   :  { %s2030_s24 = smov 128   ;;  %s2031_s25 = smov 8  }
   0xb   :  { %27 = dma.hbm_to_vmem [thread:$0]  %s2439_s2, 512, %s22_s22, [#allocation5], %s2030_s24, %s2030_s24, %s2031_s25  }
   0xc   :  { %2025 = dma.done.wait [#allocation5], 512  }
   0xd   :  { %2026 = vsyncadd [#allocation5], 4294966784  ;;  %v2077_v0 = vld [vmem:[%s2441_s4] sm:$0xff]  ;;  %v2082_v1 = vld [vmem:[%s2441_s4 + $0x8] sm:$0xff] }
   0xe   :  { %v2087_v2 = vld [vmem:[%s2441_s4 + $0x10] sm:$0xff]  ;;  %v2092_v3 = vld [vmem:[%s2441_s4 + $0x18] sm:$0xff]  ;;  %v2097_v4 = vld [vmem:[%s2441_s4 + $0x20] sm:$0xff] }
   0xf   :  { %v2102_v5 = vld [vmem:[%s2441_s4 + $0x28] sm:$0xff]  ;;  %v2107_v6 = vld [vmem:[%s2441_s4 + $0x30] sm:$0xff]  ;;  %v2112_v7 = vld [vmem:[%s2441_s4 + $0x38] sm:$0xff] }
  0x10   :  { %v2117_v8 = vld [vmem:[%s2441_s4 + $0x40] sm:$0xff]  ;;  %v2122_v9 = vld [vmem:[%s2441_s4 + $0x48] sm:$0xff]  ;;  %v2127_v10 = vld [vmem:[%s2441_s4 + $0x50] sm:$0xff] }
  0x11   :  { %v2132_v11 = vld [vmem:[%s2441_s4 + $0x58] sm:$0xff] }
  0x12   :  { %99 = vsyncadd [#allocation3], 1536  ;;  %v100_v12 = vld [vmem:[%s2438_s1] sm:$0xff]  ;;  %vm120_vm0 = vcmask 64512   ;;  %v2032_v14 = vmov 0.0   ;;  %v2141_v15 = vld [vmem:[#allocation4 + $0x18] sm:$0xff] }
  0x13   :  { %v105_v13 = vld [vmem:[%s2437_s0] sm:$0xff]  ;;  %1781 = vmatprep.subr.mxu0 %v100_v12  ;;  %1795 = vmatprep.subr.mxu1 %v2032_v14  ;;  %v106_v16 = vld [vmem:[%s2437_s0 + $0x8] sm:$0xff]  ;;  %v2147_v17 = vld [vmem:[#allocation4 + $0x10] sm:$0xff]  ;;  %vm2033_vm1 = vmmov 0   ;;  %s2034_s9 = smov 64   ;;  %vm250_vm2 = vcmask 261120  }
  0x14   :  { %1782 = vmatpush3.msra.mxu0 %v100_v12  ;;  %1783 = vmatprep.mubr.msk.f32.mxu0 %vm120_vm0, %v105_v13  ;;  %v2152_v18 = vld [vmem:[#allocation4 + $0x8] sm:$0xff]  ;;  %v2159_v19 = vld [vmem:[#allocation4] sm:$0xff]  ;;  %v107_v55 = vld [vmem:[%s2437_s0 + $0x10] sm:$0xff] }
  0x15   :  { %1796 = vmatpush3.msra.mxu1 %v2141_v15  ;;  %1784 = vmatmul.mubr.msk.f32.vlgmr.msra.gmra.mxu0 %vm120_vm0, %v106_v16  ;;  %v2187_v21 = vld [vmem:[%s2440_s3] ss:$0 sm:$0xff]  ;;  %s2035_s3 = smov 32   ;;  %v108_v56 = vld [vmem:[%s2437_s0 + $0x18] sm:$0xff]  ;;  %v110_v58 = vld [vmem:[%s2437_s0 + $0x28] sm:$0xff] }
  0x16   :  { %1797 = vmatprep.subr.mxu1 %v2032_v14  ;;  %1803 = vmatprep.mubr.msk.f32.mxu1 %vm2033_vm1, %v2032_v14  ;;  %v109_v57 = vld [vmem:[%s2437_s0 + $0x20] sm:$0xff]  ;;  %v111_v59 = vld [vmem:[%s2437_s0 + $0x30] sm:$0xff]  ;;  %v112_v60 = vld [vmem:[%s2437_s0 + $0x38] sm:$0xff] }
  0x17   :  { %1798 = vmatpush3.msra.mxu1 %v2147_v17  ;;  %1817 = vmatprep.subr.mxu0 %v2032_v14 }
  0x18   :  { %1799 = vmatprep.subr.mxu1 %v2032_v14  ;;  %1818 = vmatpush3.msra.mxu0 %v2141_v15 }
  0x19   :  { %1800 = vmatpush3.msra.mxu1 %v2152_v18  ;;  %1819 = vmatprep.subr.mxu0 %v2032_v14 }
  0x1a   :  { %1801 = vmatprep.subr.mxu1 %v2032_v14  ;;  %1820 = vmatpush3.msra.mxu0 %v2147_v17 }
  0x1b   :  { %1802 = vmatpush3.msra.mxu1 %v2159_v19  ;;  %1821 = vmatprep.subr.mxu0 %v2032_v14 }
  0x1c   :  { %1804 = vmatmul.mubr.f32.vlgmr.msra.gmra.mxu1 %v2032_v14  ;;  %1806 = vmatprep.subr.mxu1 %v2032_v14 }
  0x1d   :  { %1807 = vmatpush3.msra.mxu1 %v2141_v15  ;;  %1814 = vmatprep.mubr.msk.f32.mxu1 %vm2033_vm1, %v2032_v14 }
  0x1e   :  { %1808 = vmatprep.subr.mxu1 %v2032_v14  ;;  %1822 = vmatpush3.msra.mxu0 %v2152_v18 }
  0x1f   :  { %1809 = vmatpush3.msra.mxu1 %v2147_v17  ;;  %1823 = vmatprep.subr.mxu0 %v2032_v14 }
  0x20   :  { %1810 = vmatprep.subr.mxu1 %v2032_v14  ;;  %1824 = vmatpush3.msra.mxu0 %v2159_v19 }
  0x21   :  { %1811 = vmatpush3.msra.mxu1 %v2152_v18  ;;  %1839 = vmatprep.subr.mxu0 %v2032_v14 }
  0x22   :  { %1812 = vmatprep.subr.mxu1 %v2032_v14  ;;  %1786 = vmatprep.mubr.msk.f32.mxu0 %vm120_vm0, %v107_v55 }
  0x23   :  { %1813 = vmatpush3.msra.mxu1 %v2159_v19  ;;  %1787 = vmatmul.mubr.msk.f32.gmra.mxu0 %vm120_vm0, %v108_v56 }
  0x24   :  { %1828 = vmatprep.subr.mxu1 %v2032_v14  ;;  %1789 = vmatprep.mubr.msk.f32.mxu0 %vm120_vm0, %v109_v57 }
  0x27   :  { %1790 = vmatmul.mubr.msk.f32.gmra.mxu0 %vm120_vm0, %v110_v58 }
  0x28   :  { %1792 = vmatprep.mubr.msk.f32.mxu0 %vm120_vm0, %v111_v59 }
  0x2b   :  { %1793 = vmatmul.mubr.msk.f32.gmra.mxu0 %vm120_vm0, %v112_v60 }
  0x2c   :  { %1825 = vmatprep.mubr.msk.f32.mxu0 %vm2033_vm1, %v2032_v14 }
  0xd5   :  { %v1785_v20 = vpop.f32.mrf.mxu0 }
  0xd6   :  { %v217_v41 = vadd.f32 %v1785_v20, %v2187_v21 }
  0xd7   :  { %v211_v22 = vpop.f32.mrf.mxu0 }
  0xd8   :  { %v212_v23 = vadd.f32 %v2187_v21, %v211_v22 }
  0xdc   :  { %v320_v24 = vpop.f32.mrf.mxu1 }
  0xdd   :  { %v324_v25 = vadd.f32 %v320_v24, %v212_v23 }
  0xde   :  { %v1805_v26 = vpop.f32.mrf.mxu1 }
  0xdf   :  { %1901 = vtanh.f32 %v324_v25  ;;  %v1695_v28 = vmul.f32 -1.442695, %v324_v25 }
  0xe1   :  { %1903 = vpow2.f32 %v1695_v28 }
  0xe3   :  { %v1788_v13 = vpop.f32.mrf.mxu0 }
  0xe5   :  { %v221_v16 = vpop.f32.mrf.mxu0 }
  0xe6   :  { %v222_v25 = vadd.f32 %v2187_v21, %v221_v16 }
  0xe7   :  { %v2247_v20 = vpop.f32.mrf.mxu0 }
  0xe9   :  { %v2249_v22 = vpop.f32.mrf.mxu0 }
  0xeb   :  { %v2251_v23 = vpop.f32.mrf.mxu0 }
  0xec   :  { %v1902_v27 = vpop.eup %1901 }
  0xed   :  { %334 = vrot.lane.b32.xlu0 %v1902_v27, %s2034_s9  ;;  %v2253_v24 = vpop.f32.mrf.mxu0 }
  0xee   :  { %v1904_v29 = vpop.eup %1903 }
  0xef   :  { %v328_v30 = vadd.f32 1.0, %v1904_v29 }
  0xf1   :  { %1905 = vrcp.f32 %v328_v30 }
  0xfe   :  { %v1906_v31 = vpop.eup %1905 }
  0xff   :  { %v332_v34 = vmul.f32 0.0, %v1906_v31 }
 0x15f   :  { %v335_v32 = vpop.permute.xlu0 %334 }
 0x160   :  { %v337_v33 = vmul.f32 %v1906_v31, %v335_v32 }
 0x162   :  { %339 = vrot.lane.b32.xlu0 %v337_v33, %s2035_s3 }
 0x1d4   :  { %v340_v35 = vpop.permute.xlu0 %339 }
 0x1d5   :  { %v342_v36 = vadd.f32 %v340_v35, %v332_v34 }
 0x1d7   :  { %1907 = vtanh.f32 %v342_v36 }
 0x1e4   :  { %v1908_v37 = vpop.eup %1907 }
 0x1e5   :  { %345 = vrot.lane.b32.xlu1 %v1908_v37, %s2034_s9 }
 0x257   :  { %v346_v38 = vpop.permute.xlu1 %345 }
 0x258   :  { %v348_v39 = vmul.f32 %v1906_v31, %v346_v38 }
 0x25a   :  { %350 = vrot.lane.b32.xlu1 %v348_v39, %s2035_s3 }
 0x2cc   :  { %v351_v40 = vpop.permute.xlu1 %350 }
 0x2cd   :  { %1815 = vmatmul.mubr.msk.f32.vlgmr.msra.gmra.mxu1 %vm250_vm2, %v351_v40 }
 0x2ce   :  { %1829 = vmatpush3.msra.mxu1 %v2141_v15  ;;  %1836 = vmatprep.mubr.msk.f32.mxu1 %vm2033_vm1, %v2032_v14 }
 0x2cf   :  { %1830 = vmatprep.subr.mxu1 %v2032_v14 }
 0x2d0   :  { %1831 = vmatpush3.msra.mxu1 %v2147_v17 }
 0x2d1   :  { %1832 = vmatprep.subr.mxu1 %v2032_v14 }
 0x2d2   :  { %1833 = vmatpush3.msra.mxu1 %v2152_v18 }
 0x2d3   :  { %1834 = vmatprep.subr.mxu1 %v2032_v14 }
 0x2d4   :  { %1835 = vmatpush3.msra.mxu1 %v2159_v19 }
 0x2d5   :  { %1850 = vmatprep.subr.mxu1 %v2032_v14 }
 0x38d   :  { %v420_v42 = vpop.f32.mrf.mxu1 }
 0x38e   :  { %v424_v43 = vadd.f32 %v420_v42, %v217_v41 }
 0x38f   :  { %v1816_v44 = vpop.f32.mrf.mxu1 }
 0x390   :  { %1909 = vtanh.f32 %v424_v43  ;;  %v1697_v46 = vmul.f32 -1.442695, %v424_v43  ;;  %v227_v43 = vadd.f32 %v1788_v13, %v2187_v21 }
 0x392   :  { %1911 = vpow2.f32 %v1697_v46 }
 0x39d   :  { %v1910_v45 = vpop.eup %1909 }
 0x39e   :  { %434 = vrot.lane.b32.xlu0 %v1910_v45, %s2034_s9 }
 0x39f   :  { %v1912_v47 = vpop.eup %1911 }
 0x3a0   :  { %v428_v48 = vadd.f32 1.0, %v1912_v47 }
 0x3a2   :  { %1913 = vrcp.f32 %v428_v48 }
 0x3af   :  { %v1914_v49 = vpop.eup %1913 }
 0x3b0   :  { %v432_v52 = vmul.f32 %v1914_v49, %v342_v36 }
 0x410   :  { %v435_v50 = vpop.permute.xlu0 %434 }
 0x411   :  { %v437_v51 = vmul.f32 %v1914_v49, %v435_v50 }
 0x413   :  { %439 = vrot.lane.b32.xlu1 %v437_v51, %s2035_s3 }
 0x485   :  { %v440_v53 = vpop.permute.xlu1 %439 }
 0x486   :  { %v442_v54 = vadd.f32 %v440_v53, %v432_v52 }
 0x488   :  { %1915 = vtanh.f32 %v442_v54 }
 0x495   :  { %v1916_v61 = vpop.eup %1915 }
 0x496   :  { %445 = vrot.lane.b32.xlu0 %v1916_v61, %s2034_s9  ;;  %v232_v61 = vadd.f32 %v2187_v21, %v2249_v22 }
 0x508   :  { %v446_v62 = vpop.permute.xlu0 %445 }
 0x509   :  { %v448_v63 = vmul.f32 %v1914_v49, %v446_v62 }
 0x50b   :  { %450 = vrot.lane.b32.xlu1 %v448_v63, %s2035_s3 }
 0x57d   :  { %v451_v12 = vpop.permute.xlu1 %450 }
 0x57e   :  { %1826 = vmatmul.mubr.msk.f32.vlgmr.msra.gmra.mxu0 %vm250_vm2, %v451_v12 }
 0x57f   :  { %1840 = vmatpush3.msra.mxu0 %v2141_v15  ;;  %1847 = vmatprep.mubr.msk.f32.mxu0 %vm2033_vm1, %v2032_v14 }
 0x580   :  { %1841 = vmatprep.subr.mxu0 %v2032_v14 }
 0x581   :  { %1842 = vmatpush3.msra.mxu0 %v2147_v17 }
 0x582   :  { %1843 = vmatprep.subr.mxu0 %v2032_v14 }
 0x583   :  { %1844 = vmatpush3.msra.mxu0 %v2152_v18 }
 0x584   :  { %1845 = vmatprep.subr.mxu0 %v2032_v14 }
 0x585   :  { %1846 = vmatpush3.msra.mxu0 %v2159_v19 }
 0x586   :  { %1861 = vmatprep.subr.mxu0 %v2032_v14 }
 0x63e   :  { %v520_v26 = vpop.f32.mrf.mxu0 }
 0x63f   :  { %v524_v27 = vadd.f32 %v520_v26, %v222_v25 }
 0x640   :  { %v1827_v28 = vpop.f32.mrf.mxu0 }
 0x641   :  { %1917 = vtanh.f32 %v524_v27  ;;  %v1699_v30 = vmul.f32 -1.442695, %v524_v27 }
 0x643   :  { %1919 = vpow2.f32 %v1699_v30 }
 0x64e   :  { %v1918_v29 = vpop.eup %1917 }
 0x64f   :  { %534 = vrot.lane.b32.xlu0 %v1918_v29, %s2034_s9 }
 0x650   :  { %v1920_v31 = vpop.eup %1919 }
 0x651   :  { %v528_v32 = vadd.f32 1.0, %v1920_v31 }
 0x653   :  { %1921 = vrcp.f32 %v528_v32 }
 0x660   :  { %v1922_v33 = vpop.eup %1921 }
 0x661   :  { %v532_v36 = vmul.f32 %v1922_v33, %v442_v54 }
 0x6c1   :  { %v535_v34 = vpop.permute.xlu0 %534 }
 0x6c2   :  { %v537_v35 = vmul.f32 %v1922_v33, %v535_v34 }
 0x6c4   :  { %539 = vrot.lane.b32.xlu1 %v537_v35, %s2035_s3 }
 0x736   :  { %v540_v37 = vpop.permute.xlu1 %539 }
 0x737   :  { %v542_v38 = vadd.f32 %v540_v37, %v532_v36  ;;  %v237_v36 = vadd.f32 %v2247_v20, %v2187_v21 }
 0x739   :  { %1923 = vtanh.f32 %v542_v38 }
 0x746   :  { %v1924_v39 = vpop.eup %1923 }
 0x747   :  { %545 = vrot.lane.b32.xlu0 %v1924_v39, %s2034_s9 }
 0x7b9   :  { %v546_v40 = vpop.permute.xlu0 %545 }
 0x7ba   :  { %v548_v41 = vmul.f32 %v1922_v33, %v546_v40 }
 0x7bc   :  { %550 = vrot.lane.b32.xlu1 %v548_v41, %s2035_s3 }
 0x82e   :  { %v551_v42 = vpop.permute.xlu1 %550 }
 0x82f   :  { %1837 = vmatmul.mubr.msk.f32.vlgmr.msra.gmra.mxu1 %vm250_vm2, %v551_v42 }
 0x830   :  { %1851 = vmatpush3.msra.mxu1 %v2141_v15  ;;  %1858 = vmatprep.mubr.msk.f32.mxu1 %vm2033_vm1, %v2032_v14 }
 0x831   :  { %1852 = vmatprep.subr.mxu1 %v2032_v14 }
 0x832   :  { %1853 = vmatpush3.msra.mxu1 %v2147_v17 }
 0x833   :  { %1854 = vmatprep.subr.mxu1 %v2032_v14 }
 0x834   :  { %1855 = vmatpush3.msra.mxu1 %v2152_v18 }
 0x835   :  { %1856 = vmatprep.subr.mxu1 %v2032_v14 }
 0x836   :  { %1857 = vmatpush3.msra.mxu1 %v2159_v19 }
 0x837   :  { %1872 = vmatprep.subr.mxu1 %v2032_v14 }
 0x8ef   :  { %v620_v44 = vpop.f32.mrf.mxu1 }
 0x8f0   :  { %v624_v45 = vadd.f32 %v620_v44, %v227_v43 }
 0x8f1   :  { %v1838_v46 = vpop.f32.mrf.mxu1 }
 0x8f2   :  { %1925 = vtanh.f32 %v624_v45  ;;  %v1701_v48 = vmul.f32 -1.442695, %v624_v45 }
 0x8f4   :  { %1927 = vpow2.f32 %v1701_v48 }
 0x8ff   :  { %v1926_v47 = vpop.eup %1925 }
 0x900   :  { %634 = vrot.lane.b32.xlu0 %v1926_v47, %s2034_s9 }
 0x901   :  { %v1928_v49 = vpop.eup %1927 }
 0x902   :  { %v628_v50 = vadd.f32 1.0, %v1928_v49  ;;  %v242_v49 = vadd.f32 %v2187_v21, %v2253_v24 }
 0x904   :  { %1929 = vrcp.f32 %v628_v50 }
 0x911   :  { %v1930_v51 = vpop.eup %1929 }
 0x912   :  { %v632_v54 = vmul.f32 %v1930_v51, %v542_v38 }
 0x972   :  { %v635_v52 = vpop.permute.xlu0 %634 }
 0x973   :  { %v637_v53 = vmul.f32 %v1930_v51, %v635_v52 }
 0x975   :  { %639 = vrot.lane.b32.xlu1 %v637_v53, %s2035_s3 }
 0x9e7   :  { %v640_v55 = vpop.permute.xlu1 %639 }
 0x9e8   :  { %v642_v56 = vadd.f32 %v640_v55, %v632_v54 }
 0x9ea   :  { %1931 = vtanh.f32 %v642_v56 }
 0x9f7   :  { %v1932_v57 = vpop.eup %1931 }
 0x9f8   :  { %645 = vrot.lane.b32.xlu0 %v1932_v57, %s2034_s9 }
 0xa6a   :  { %v646_v58 = vpop.permute.xlu0 %645 }
 0xa6b   :  { %v648_v59 = vmul.f32 %v1930_v51, %v646_v58 }
 0xa6d   :  { %650 = vrot.lane.b32.xlu1 %v648_v59, %s2035_s3 }
 0xadf   :  { %v651_v60 = vpop.permute.xlu1 %650 }
 0xae0   :  { %1848 = vmatmul.mubr.msk.f32.vlgmr.msra.gmra.mxu0 %vm250_vm2, %v651_v60 }
 0xae1   :  { %1862 = vmatpush3.msra.mxu0 %v2141_v15  ;;  %1869 = vmatprep.mubr.msk.f32.mxu0 %vm2033_vm1, %v2032_v14 }
 0xae2   :  { %1863 = vmatprep.subr.mxu0 %v2032_v14 }
 0xae3   :  { %1864 = vmatpush3.msra.mxu0 %v2147_v17 }
 0xae4   :  { %1865 = vmatprep.subr.mxu0 %v2032_v14 }
 0xae5   :  { %1866 = vmatpush3.msra.mxu0 %v2152_v18 }
 0xae6   :  { %1867 = vmatprep.subr.mxu0 %v2032_v14 }
 0xae7   :  { %1868 = vmatpush3.msra.mxu0 %v2159_v19 }
 0xae8   :  { %1883 = vmatprep.subr.mxu0 %v2032_v14 }
 0xba0   :  { %v720_v62 = vpop.f32.mrf.mxu0 }
 0xba1   :  { %v724_v63 = vadd.f32 %v720_v62, %v232_v61 }
 0xba2   :  { %v1849_v12 = vpop.f32.mrf.mxu0 }
 0xba3   :  { %1933 = vtanh.f32 %v724_v63  ;;  %v1703_v16 = vmul.f32 -1.442695, %v724_v63 }
 0xba5   :  { %1935 = vpow2.f32 %v1703_v16  ;;  %v247_v16 = vadd.f32 %v2251_v23, %v2187_v21 }
 0xbb0   :  { %v1934_v13 = vpop.eup %1933 }
 0xbb1   :  { %734 = vrot.lane.b32.xlu0 %v1934_v13, %s2034_s9 }
 0xbb2   :  { %v1936_v25 = vpop.eup %1935 }
 0xbb3   :  { %v728_v26 = vadd.f32 1.0, %v1936_v25 }
 0xbb5   :  { %1937 = vrcp.f32 %v728_v26 }
 0xbc2   :  { %v1938_v27 = vpop.eup %1937 }
 0xbc3   :  { %v732_v30 = vmul.f32 %v1938_v27, %v642_v56 }
 0xc23   :  { %v735_v28 = vpop.permute.xlu0 %734 }
 0xc24   :  { %v737_v29 = vmul.f32 %v1938_v27, %v735_v28 }
 0xc26   :  { %739 = vrot.lane.b32.xlu1 %v737_v29, %s2035_s3 }
 0xc98   :  { %v740_v31 = vpop.permute.xlu1 %739 }
 0xc99   :  { %v742_v22 = vadd.f32 %v740_v31, %v732_v30 }
 0xc9b   :  { %1939 = vtanh.f32 %v742_v22 }
 0xca8   :  { %v1940_v32 = vpop.eup %1939 }
 0xca9   :  { %745 = vrot.lane.b32.xlu0 %v1940_v32, %s2034_s9 }
 0xd1b   :  { %v746_v33 = vpop.permute.xlu0 %745 }
 0xd1c   :  { %v748_v34 = vmul.f32 %v1938_v27, %v746_v33 }
 0xd1e   :  { %750 = vrot.lane.b32.xlu1 %v748_v34, %s2035_s3 }
 0xd90   :  { %v751_v35 = vpop.permute.xlu1 %750 }
 0xd91   :  { %1859 = vmatmul.mubr.msk.f32.vlgmr.msra.gmra.mxu1 %vm250_vm2, %v751_v35 }
 0xd92   :  { %1873 = vmatpush3.msra.mxu1 %v2141_v15  ;;  %1880 = vmatprep.mubr.msk.f32.mxu1 %vm2033_vm1, %v2032_v14 }
 0xd93   :  { %1874 = vmatprep.subr.mxu1 %v2032_v14 }
 0xd94   :  { %1875 = vmatpush3.msra.mxu1 %v2147_v17 }
 0xd95   :  { %1876 = vmatprep.subr.mxu1 %v2032_v14 }
 0xd96   :  { %1877 = vmatpush3.msra.mxu1 %v2152_v18 }
 0xd97   :  { %1878 = vmatprep.subr.mxu1 %v2032_v14 }
 0xd98   :  { %1879 = vmatpush3.msra.mxu1 %v2159_v19 }
 0xe51   :  { %v820_v37 = vpop.f32.mrf.mxu1 }
 0xe52   :  { %v824_v15 = vadd.f32 %v820_v37, %v237_v36 }
 0xe53   :  { %v1860_v38 = vpop.f32.mrf.mxu1 }
 0xe54   :  { %1941 = vtanh.f32 %v824_v15  ;;  %v1705_v40 = vmul.f32 -1.442695, %v824_v15 }
 0xe56   :  { %1943 = vpow2.f32 %v1705_v40 }
 0xe61   :  { %v1942_v39 = vpop.eup %1941 }
 0xe62   :  { %834 = vrot.lane.b32.xlu0 %v1942_v39, %s2034_s9 }
 0xe63   :  { %v1944_v17 = vpop.eup %1943 }
 0xe64   :  { %v828_v41 = vadd.f32 1.0, %v1944_v17 }
 0xe66   :  { %1945 = vrcp.f32 %v828_v41 }
 0xe73   :  { %v1946_v18 = vpop.eup %1945 }
 0xe74   :  { %v832_v19 = vmul.f32 %v1946_v18, %v742_v22 }
 0xed4   :  { %v835_v42 = vpop.permute.xlu0 %834 }
 0xed5   :  { %v837_v43 = vmul.f32 %v1946_v18, %v835_v42 }
 0xed7   :  { %839 = vrot.lane.b32.xlu1 %v837_v43, %s2035_s3 }
 0xf49   :  { %v840_v44 = vpop.permute.xlu1 %839 }
 0xf4a   :  { %v842_v20 = vadd.f32 %v840_v44, %v832_v19 }
 0xf4c   :  { %1947 = vtanh.f32 %v842_v20 }
 0xf59   :  { %v1948_v45 = vpop.eup %1947 }
 0xf5a   :  { %845 = vrot.lane.b32.xlu0 %v1948_v45, %s2034_s9 }
 0xfcc   :  { %v846_v46 = vpop.permute.xlu0 %845 }
 0xfcd   :  { %v848_v47 = vmul.f32 %v1946_v18, %v846_v46 }
 0xfcf   :  { %850 = vrot.lane.b32.xlu1 %v848_v47, %s2035_s3 }
0x1041   :  { %v851_v48 = vpop.permute.xlu1 %850 }
0x1042   :  { %1870 = vmatmul.mubr.msk.f32.vlgmr.msra.gmra.mxu0 %vm250_vm2, %v851_v48 }
0x1102   :  { %v920_v50 = vpop.f32.mrf.mxu0 }
0x1103   :  { %v924_v51 = vadd.f32 %v920_v50, %v242_v49 }
0x1104   :  { %v1871_v52 = vpop.f32.mrf.mxu0 }
0x1105   :  { %1949 = vtanh.f32 %v924_v51  ;;  %v1707_v54 = vmul.f32 -1.442695, %v924_v51 }
0x1107   :  { %1951 = vpow2.f32 %v1707_v54 }
0x1112   :  { %v1950_v53 = vpop.eup %1949 }
0x1113   :  { %934 = vrot.lane.b32.xlu0 %v1950_v53, %s2034_s9 }
0x1114   :  { %v1952_v55 = vpop.eup %1951 }
0x1115   :  { %v928_v56 = vadd.f32 1.0, %v1952_v55 }
0x1117   :  { %1953 = vrcp.f32 %v928_v56 }
0x1124   :  { %v1954_v57 = vpop.eup %1953 }
0x1125   :  { %v932_v60 = vmul.f32 %v1954_v57, %v842_v20 }
0x1185   :  { %v935_v58 = vpop.permute.xlu0 %934 }
0x1186   :  { %v937_v59 = vmul.f32 %v1954_v57, %v935_v58 }
0x1188   :  { %939 = vrot.lane.b32.xlu1 %v937_v59, %s2035_s3 }
0x11fa   :  { %v940_v61 = vpop.permute.xlu1 %939 }
0x11fb   :  { %v942_v24 = vadd.f32 %v940_v61, %v932_v60 }
0x11fd   :  { %1955 = vtanh.f32 %v942_v24 }
0x120a   :  { %v1956_v62 = vpop.eup %1955 }
0x120b   :  { %945 = vrot.lane.b32.xlu0 %v1956_v62, %s2034_s9 }
0x127d   :  { %v946_v63 = vpop.permute.xlu0 %945 }
0x127e   :  { %v948_v12 = vmul.f32 %v1954_v57, %v946_v63 }
0x1280   :  { %950 = vrot.lane.b32.xlu1 %v948_v12, %s2035_s3 }
0x12f2   :  { %v951_v13 = vpop.permute.xlu1 %950 }
0x12f3   :  { %1881 = vmatmul.mubr.msk.f32.vlgmr.msra.gmra.mxu1 %vm250_vm2, %v951_v13 }
0x13b3   :  { %v1020_v25 = vpop.f32.mrf.mxu1 }
0x13b4   :  { %v1024_v26 = vadd.f32 %v1020_v25, %v247_v16 }
0x13b5   :  { %v1882_v27 = vpop.f32.mrf.mxu1 }
0x13b6   :  { %1957 = vtanh.f32 %v1024_v26  ;;  %v1709_v29 = vmul.f32 -1.442695, %v1024_v26 }
0x13b8   :  { %1959 = vpow2.f32 %v1709_v29 }
0x13c3   :  { %v1958_v28 = vpop.eup %1957 }
0x13c4   :  { %1034 = vrot.lane.b32.xlu0 %v1958_v28, %s2034_s9 }
0x13c5   :  { %v1960_v30 = vpop.eup %1959 }
0x13c6   :  { %v1028_v31 = vadd.f32 1.0, %v1960_v30 }
0x13c8   :  { %1961 = vrcp.f32 %v1028_v31 }
0x13d5   :  { %v1962_v22 = vpop.eup %1961 }
0x13d6   :  { %v1032_v34 = vmul.f32 %v1962_v22, %v942_v24 }
0x1436   :  { %v1035_v32 = vpop.permute.xlu0 %1034 }
0x1437   :  { %v1037_v33 = vmul.f32 %v1962_v22, %v1035_v32 }
0x1439   :  { %1039 = vrot.lane.b32.xlu1 %v1037_v33, %s2035_s3 }
0x14ab   :  { %v1040_v35 = vpop.permute.xlu1 %1039 }
0x14ac   :  { %v1042_v21 = vadd.f32 %v1040_v35, %v1032_v34 }
0x14ae   :  { %1963 = vtanh.f32 %v1042_v21 }
0x14bb   :  { %v1964_v23 = vpop.eup %1963 }
0x14bc   :  { %1045 = vrot.lane.b32.xlu0 %v1964_v23, %s2034_s9 }
0x152e   :  { %v1046_v36 = vpop.permute.xlu0 %1045 }
0x152f   :  { %v1048_v37 = vmul.f32 %v1962_v22, %v1046_v36 }
0x1531   :  { %1085 = vrot.lane.b32.xlu0 %v1048_v37, %s2035_s3 }
0x1532   :  { %2027 = dma.done.wait [#allocation3], 1536 }
0x1533   :  { %2028 = vsyncadd [#allocation3], 4294965760  ;;  %1884 = vmatpush3.msra.mxu0 %v2122_v9  ;;  %1891 = vmatprep.mubr.msk.f32.mxu0 %vm2033_vm1, %v2032_v14  ;;  %v1074_v48 = vlaneseq  ;;  %v1072_v51 = vld [vmem:[%s2442_s5 + $0x1] sm:$0x3] }
0x1534   :  { %1885 = vmatprep.subr.mxu0 %v2032_v14  ;;  %1212 = vmatprep.subr.mxu1 %v2132_v11 }
0x1535   :  { %1886 = vmatpush3.msra.mxu0 %v2107_v6  ;;  %1213 = vmatpush1.msra.mxu1 %v2127_v10  ;;  %v1075_v49 = vshrl.u32 %v1074_v48, 7 }
0x1536   :  { %1887 = vmatprep.subr.mxu0 %v2032_v14  ;;  %1214 = vmatprep.subr.mxu1 %v2117_v8 }
0x1537   :  { %1888 = vmatpush3.msra.mxu0 %v2092_v3  ;;  %1215 = vmatpush1.msra.mxu1 %v2112_v7  ;;  %v1076_v50 = vsub.s32 0, %v1075_v49  ;;  %v1080_v52 = vsub.s32 1, %v1075_v49 }
0x1538   :  { %1889 = vmatprep.subr.mxu0 %v2032_v14  ;;  %1216 = vmatprep.subr.mxu1 %v2102_v5 }
0x1539   :  { %1890 = vmatpush3.msra.mxu0 %v2077_v0  ;;  %1217 = vmatpush1.msra.mxu1 %v2097_v4  ;;  %v1710_v0 = vld [vmem:[%s2442_s5] ss:$0 sm:$0xff]  ;;  %v2373_v53 = vrot.slane %v1072_v51, %v1076_v50  ;;  %v2375_v54 = vrot.slane %v1072_v51, %v1080_v52 }
0x153a   :  { %1218 = vmatprep.subr.mxu1 %v2087_v2  ;;  %1252 = vmatprep.mubr.f32.mxu1 %v2032_v14 }
0x153b   :  { %1219 = vmatpush1.msra.mxu1 %v2082_v1  ;;  %1313 = vmatprep.subr.mxu0 %v2132_v11 }
0x153c   :  { %1415 = vmatprep.subr.mxu1 %v2132_v11 }
0x15a3   :  { %v1086_v3 = vpop.permute.xlu0 %1085 }
0x15a4   :  { %1892 = vmatmul.mubr.msk.f32.vlgmr.msra.gmra.mxu0 %vm250_vm2, %v1086_v3 }
0x15a5   :  { %1314 = vmatpush1.msra.mxu0 %v2127_v10  ;;  %1353 = vmatprep.mubr.f32.mxu0 %v2032_v14 }
0x15a6   :  { %1315 = vmatprep.subr.mxu0 %v2117_v8 }
0x15a7   :  { %1316 = vmatpush1.msra.mxu0 %v2112_v7 }
0x15a8   :  { %1317 = vmatprep.subr.mxu0 %v2102_v5 }
0x15a9   :  { %1318 = vmatpush1.msra.mxu0 %v2097_v4 }
0x15aa   :  { %1319 = vmatprep.subr.mxu0 %v2087_v2 }
0x15ab   :  { %1320 = vmatpush1.msra.mxu0 %v2082_v1 }
0x15ac   :  { %1517 = vmatprep.subr.mxu0 %v2132_v11 }
0x1664   :  { %v1155_v6 = vpop.f32.mrf.mxu0 }
0x1665   :  { %v1156_v9 = vadd.f32 %v1710_v0, %v1155_v6 }
0x1666   :  { %v1893_v15 = vpop.f32.mrf.mxu0 }
0x1667   :  { %1965 = vtanh.f32 %v1156_v9  ;;  %v1712_v39 = vmul.f32 -1.442695, %v1156_v9 }
0x1669   :  { %1967 = vpow2.f32 %v1712_v39 }
0x1674   :  { %v1966_v38 = vpop.eup %1965 }
0x1675   :  { %1168 = vrot.lane.b32.xlu0 %v1966_v38, %s2034_s9 }
0x1676   :  { %v1968_v40 = vpop.eup %1967 }
0x1677   :  { %v1162_v17 = vadd.f32 1.0, %v1968_v40 }
0x1679   :  { %1969 = vrcp.f32 %v1162_v17 }
0x1686   :  { %v1970_v41 = vpop.eup %1969 }
0x1687   :  { %v1166_v43 = vmul.f32 %v1970_v41, %v1042_v21 }
0x16e7   :  { %v1169_v18 = vpop.permute.xlu0 %1168 }
0x16e8   :  { %v1171_v42 = vmul.f32 %v1970_v41, %v1169_v18 }
0x16ea   :  { %1173 = vrot.lane.b32.xlu1 %v1171_v42, %s2035_s3 }
0x175c   :  { %v1174_v19 = vpop.permute.xlu1 %1173 }
0x175d   :  { %v1176_v44 = vadd.f32 %v1174_v19, %v1166_v43 }
0x175f   :  { %1971 = vtanh.f32 %v1176_v44 }
0x176c   :  { %v1972_v20 = vpop.eup %1971 }
0x176d   :  { %1179 = vrot.lane.b32.xlu1 %v1972_v20, %s2034_s9 }
0x17df   :  { %v1180_v45 = vpop.permute.xlu1 %1179 }
0x17e0   :  { %v1182_v46 = vmul.f32 %v1970_v41, %v1180_v45 }
0x17e2   :  { %1184 = vrot.lane.b32.xlu0 %v1182_v46, %s2035_s3 }
0x1854   :  { %v1185_v47 = vpop.permute.xlu0 %1184 }
0x1855   :  { %1713 = vmatmul.mubr.msk.f32.vlgmr.msra.gmra.mxu1 %vm250_vm2, %v1185_v47 }
0x1856   :  { %1416 = vmatpush1.msra.mxu1 %v2127_v10  ;;  %1455 = vmatprep.mubr.f32.mxu1 %v2032_v14 }
0x1857   :  { %1417 = vmatprep.subr.mxu1 %v2117_v8 }
0x1858   :  { %1418 = vmatpush1.msra.mxu1 %v2112_v7 }
0x1859   :  { %1419 = vmatprep.subr.mxu1 %v2102_v5 }
0x185a   :  { %1420 = vmatpush1.msra.mxu1 %v2097_v4 }
0x185b   :  { %1421 = vmatprep.subr.mxu1 %v2087_v2 }
0x185c   :  { %1422 = vmatpush1.msra.mxu1 %v2082_v1 }
0x185d   :  { %1619 = vmatprep.subr.mxu1 %v2132_v11 }
0x1915   :  { %v1254_v55 = vpop.f32.mrf.mxu1 }
0x1916   :  { %v1255_v56 = vadd.f32 %v1254_v55, %v2373_v53 }
0x1917   :  { %v1256_v57 = vpop.f32.mrf.mxu1 }
0x1918   :  { %1973 = vtanh.f32 %v1255_v56  ;;  %v1257_v58 = vadd.f32 %v1256_v57, %v2375_v54  ;;  %v1714_v59 = vmul.f32 -1.442695, %v1255_v56 }
0x191a   :  { %1259 = vst [vmem:[%s2443_s6] sm:$0xff] %v1257_v58  ;;  %1975 = vpow2.f32 %v1714_v59 }
0x1925   :  { %v1974_v11 = vpop.eup %1973 }
0x1926   :  { %1269 = vrot.lane.b32.xlu1 %v1974_v11, %s2034_s9 }
0x1927   :  { %v1976_v60 = vpop.eup %1975 }
0x1928   :  { %v1263_v61 = vadd.f32 1.0, %v1976_v60 }
0x192a   :  { %1977 = vrcp.f32 %v1263_v61 }
0x1937   :  { %v1978_v24 = vpop.eup %1977 }
0x1938   :  { %v1267_v12 = vmul.f32 %v1978_v24, %v1176_v44 }
0x1998   :  { %v1270_v62 = vpop.permute.xlu1 %1269 }
0x1999   :  { %v1272_v63 = vmul.f32 %v1978_v24, %v1270_v62 }
0x199b   :  { %1274 = vrot.lane.b32.xlu0 %v1272_v63, %s2035_s3 }
0x1a0d   :  { %v1275_v13 = vpop.permute.xlu0 %1274 }
0x1a0e   :  { %v1277_v16 = vadd.f32 %v1275_v13, %v1267_v12 }
0x1a10   :  { %1979 = vtanh.f32 %v1277_v16 }
0x1a1d   :  { %v1980_v25 = vpop.eup %1979 }
0x1a1e   :  { %1280 = vrot.lane.b32.xlu1 %v1980_v25, %s2034_s9 }
0x1a90   :  { %v1281_v26 = vpop.permute.xlu1 %1280 }
0x1a91   :  { %v1283_v27 = vmul.f32 %v1978_v24, %v1281_v26 }
0x1a93   :  { %1285 = vrot.lane.b32.xlu0 %v1283_v27, %s2035_s3 }
0x1b05   :  { %v1286_v28 = vpop.permute.xlu0 %1285 }
0x1b06   :  { %1715 = vmatmul.mubr.msk.f32.vlgmr.msra.gmra.mxu0 %vm250_vm2, %v1286_v28 }
0x1b07   :  { %1518 = vmatpush1.msra.mxu0 %v2127_v10  ;;  %1557 = vmatprep.mubr.f32.mxu0 %v2032_v14 }
0x1b08   :  { %1519 = vmatprep.subr.mxu0 %v2117_v8 }
0x1b09   :  { %1520 = vmatpush1.msra.mxu0 %v2112_v7 }
0x1b0a   :  { %1521 = vmatprep.subr.mxu0 %v2102_v5 }
0x1b0b   :  { %1522 = vmatpush1.msra.mxu0 %v2097_v4 }
0x1b0c   :  { %1523 = vmatprep.subr.mxu0 %v2087_v2 }
0x1b0d   :  { %1524 = vmatpush1.msra.mxu0 %v2082_v1 }
0x1bc6   :  { %v1355_v29 = vpop.f32.mrf.mxu0 }
0x1bc7   :  { %v1356_v30 = vadd.f32 %v1355_v29, %v2373_v53 }
0x1bc8   :  { %v1357_v31 = vpop.f32.mrf.mxu0 }
0x1bc9   :  { %1981 = vtanh.f32 %v1356_v30  ;;  %v1358_v22 = vadd.f32 %v1357_v31, %v2375_v54  ;;  %v1717_v33 = vmul.f32 -1.442695, %v1356_v30 }
0x1bcb   :  { %1716 = vst [vmem:[%s2443_s6 + $0x8] sm:$0xff] %v1358_v22  ;;  %1983 = vpow2.f32 %v1717_v33 }
0x1bd6   :  { %v1982_v32 = vpop.eup %1981 }
0x1bd7   :  { %1371 = vrot.lane.b32.xlu1 %v1982_v32, %s2034_s9 }
0x1bd8   :  { %v1984_v34 = vpop.eup %1983 }
0x1bd9   :  { %v1365_v35 = vadd.f32 1.0, %v1984_v34 }
0x1bdb   :  { %1985 = vrcp.f32 %v1365_v35 }
0x1be8   :  { %v1986_v21 = vpop.eup %1985 }
0x1be9   :  { %v1369_v37 = vmul.f32 %v1986_v21, %v1277_v16 }
0x1c49   :  { %v1372_v23 = vpop.permute.xlu1 %1371 }
0x1c4a   :  { %v1374_v36 = vmul.f32 %v1986_v21, %v1372_v23 }
0x1c4c   :  { %1376 = vrot.lane.b32.xlu0 %v1374_v36, %s2035_s3 }
0x1cbe   :  { %v1377_v3 = vpop.permute.xlu0 %1376 }
0x1cbf   :  { %v1379_v0 = vadd.f32 %v1377_v3, %v1369_v37 }
0x1cc1   :  { %1987 = vtanh.f32 %v1379_v0 }
0x1cce   :  { %v1988_v6 = vpop.eup %1987 }
0x1ccf   :  { %1382 = vrot.lane.b32.xlu1 %v1988_v6, %s2034_s9 }
0x1d41   :  { %v1383_v9 = vpop.permute.xlu1 %1382 }
0x1d42   :  { %v1385_v15 = vmul.f32 %v1986_v21, %v1383_v9 }
0x1d44   :  { %1387 = vrot.lane.b32.xlu0 %v1385_v15, %s2035_s3 }
0x1db6   :  { %v1388_v38 = vpop.permute.xlu0 %1387 }
0x1db7   :  { %1718 = vmatmul.mubr.msk.f32.vlgmr.msra.gmra.mxu1 %vm250_vm2, %v1388_v38 }
0x1db8   :  { %1620 = vmatpush1.msra.mxu1 %v2127_v10  ;;  %1659 = vmatprep.mubr.f32.mxu1 %v2032_v14 }
0x1db9   :  { %1621 = vmatprep.subr.mxu1 %v2117_v8 }
0x1dba   :  { %1622 = vmatpush1.msra.mxu1 %v2112_v7 }
0x1dbb   :  { %1623 = vmatprep.subr.mxu1 %v2102_v5 }
0x1dbc   :  { %1624 = vmatpush1.msra.mxu1 %v2097_v4 }
0x1dbd   :  { %1625 = vmatprep.subr.mxu1 %v2087_v2 }
0x1dbe   :  { %1626 = vmatpush1.msra.mxu1 %v2082_v1 }
0x1e77   :  { %v1457_v39 = vpop.f32.mrf.mxu1 }
0x1e78   :  { %v1458_v40 = vadd.f32 %v1457_v39, %v2373_v53 }
0x1e79   :  { %v1459_v17 = vpop.f32.mrf.mxu1 }
0x1e7a   :  { %1989 = vtanh.f32 %v1458_v40  ;;  %v1460_v10 = vadd.f32 %v1459_v17, %v2375_v54  ;;  %v1720_v5 = vmul.f32 -1.442695, %v1458_v40 }
0x1e7c   :  { %1719 = vst [vmem:[%s2443_s6 + $0x10] sm:$0xff] %v1460_v10  ;;  %1991 = vpow2.f32 %v1720_v5 }
0x1e87   :  { %v1990_v7 = vpop.eup %1989 }
0x1e88   :  { %1473 = vrot.lane.b32.xlu1 %v1990_v7, %s2034_s9 }
0x1e89   :  { %v1992_v4 = vpop.eup %1991 }
0x1e8a   :  { %v1467_v2 = vadd.f32 1.0, %v1992_v4 }
0x1e8c   :  { %1993 = vrcp.f32 %v1467_v2 }
0x1e99   :  { %v1994_v1 = vpop.eup %1993 }
0x1e9a   :  { %v1471_v41 = vmul.f32 %v1994_v1, %v1379_v0 }
0x1efa   :  { %v1474_v8 = vpop.permute.xlu1 %1473 }
0x1efb   :  { %v1476_v14 = vmul.f32 %v1994_v1, %v1474_v8 }
0x1efd   :  { %1478 = vrot.lane.b32.xlu0 %v1476_v14, %s2035_s3 }
0x1f6f   :  { %v1479_v18 = vpop.permute.xlu0 %1478 }
0x1f70   :  { %v1481_v42 = vadd.f32 %v1479_v18, %v1471_v41 }
0x1f72   :  { %1995 = vtanh.f32 %v1481_v42 }
0x1f7f   :  { %v1996_v43 = vpop.eup %1995 }
0x1f80   :  { %1484 = vrot.lane.b32.xlu1 %v1996_v43, %s2034_s9 }
0x1ff2   :  { %v1485_v19 = vpop.permute.xlu1 %1484 }
0x1ff3   :  { %v1487_v44 = vmul.f32 %v1994_v1, %v1485_v19 }
0x1ff5   :  { %1489 = vrot.lane.b32.xlu0 %v1487_v44, %s2035_s3 }
0x2067   :  { %v1490_v20 = vpop.permute.xlu0 %1489 }
0x2068   :  { %1721 = vmatmul.mubr.msk.f32.vlgmr.msra.gmra.mxu0 %vm250_vm2, %v1490_v20 }
0x2128   :  { %v1559_v45 = vpop.f32.mrf.mxu0 }
0x2129   :  { %v1560_v46 = vadd.f32 %v1559_v45, %v2373_v53 }
0x212a   :  { %v1561_v47 = vpop.f32.mrf.mxu0 }
0x212b   :  { %1997 = vtanh.f32 %v1560_v46  ;;  %v1562_v48 = vadd.f32 %v1561_v47, %v2375_v54  ;;  %v1723_v50 = vmul.f32 -1.442695, %v1560_v46 }
0x212d   :  { %1722 = vst [vmem:[%s2443_s6 + $0x18] sm:$0xff] %v1562_v48  ;;  %1999 = vpow2.f32 %v1723_v50 }
0x2138   :  { %v1998_v49 = vpop.eup %1997 }
0x2139   :  { %1575 = vrot.lane.b32.xlu1 %v1998_v49, %s2034_s9 }
0x213a   :  { %v2000_v51 = vpop.eup %1999 }
0x213b   :  { %v1569_v52 = vadd.f32 1.0, %v2000_v51 }
0x213d   :  { %2001 = vrcp.f32 %v1569_v52 }
0x214a   :  { %v2002_v55 = vpop.eup %2001 }
0x214b   :  { %v1573_v53 = vmul.f32 %v2002_v55, %v1481_v42 }
0x21ab   :  { %v1576_v56 = vpop.permute.xlu1 %1575 }
0x21ac   :  { %v1578_v57 = vmul.f32 %v2002_v55, %v1576_v56 }
0x21ae   :  { %1580 = vrot.lane.b32.xlu0 %v1578_v57, %s2035_s3 }
0x2220   :  { %v1581_v58 = vpop.permute.xlu0 %1580 }
0x2221   :  { %v1583_v11 = vadd.f32 %v1581_v58, %v1573_v53 }
0x2223   :  { %2003 = vtanh.f32 %v1583_v11 }
0x2230   :  { %v2004_v59 = vpop.eup %2003 }
0x2231   :  { %1586 = vrot.lane.b32.xlu1 %v2004_v59, %s2034_s9 }
0x22a3   :  { %v1587_v60 = vpop.permute.xlu1 %1586 }
0x22a4   :  { %v1589_v61 = vmul.f32 %v2002_v55, %v1587_v60 }
0x22a6   :  { %1591 = vrot.lane.b32.xlu0 %v1589_v61, %s2035_s3 }
0x2318   :  { %v1592_v24 = vpop.permute.xlu0 %1591 }
0x2319   :  { %1724 = vmatmul.mubr.msk.f32.vlgmr.msra.gmra.mxu1 %vm250_vm2, %v1592_v24 }
0x23d9   :  { %v1661_v62 = vpop.f32.mrf.mxu1 }
0x23db   :  { %v1662_v63 = vpop.f32.mrf.mxu1 }
0x23dc   :  { %v1663_v12 = vadd.f32 %v1662_v63, %v2375_v54 }
0x23de   :  { %1725 = vst [vmem:[%s2443_s6 + $0x20] sm:$0xff] %v1663_v12 }
0x23df   :  { %1671 = vsyncpa [#allocation5], 1 }
0x23e0   :  { %1672 = vsyncmov [#allocation3] }
0x23e3   :  { %s1673_s1 = vpop.sfrf %1672 }
0x23e4   :  { %p1726_p5 = scmp.ne.s32.totalorder %s1673_s1, 0 }
0x23e6   :  { %1677 = shalt.err (%p1726_p5)  }

</bundles_post_ra>
